<compile_context>
chip_gen: v6e
topology: v6e:2x2x1
jax: 0.10.0
libtpu: 0.0.40
codegen_flags: <defaults>
</compile_context>

<pallas_src>
import functools
import math

import jax
import jax.numpy as jnp
from jax.experimental import pallas as pl
from jax.experimental.pallas import tpu as pltpu


# ----------------------------------------------------------------------------
# Fused forward kernel.
# PyTorch Linear / RNN weights (out, in) are stored pre-transposed to (in, out);
# biases as (1, out).  Attention params per layer: (wqkv (E,3E), bqkv (1,3E),
# wo, bo, gamma, beta).
# ----------------------------------------------------------------------------
def _lm_fused_kernel(
    x_ref, emb_w, emb_b,
    a1_wqkv, a1_bqkv, a1_wo, a1_bo, a1_g, a1_beta,
    a2_wqkv, a2_bqkv, a2_wo, a2_bo, a2_g, a2_beta,
    wih, whh, bih, bhh,
    f1w, f1b, f2w, f2b, f3w, f3b,
    ow, ob,
    o_ref,
    *, batch, seq, num_heads, head_dim,
):
    B, S = batch, seq
    E = num_heads * head_dim
    V = x_ref.shape[-1]

    x2 = x_ref[...].reshape(B * S, V)

    # --- embedding = nn.Linear(vocab, emb) ----------------------------------
    h2 = jnp.dot(x2, emb_w[...], preferred_element_type=jnp.float32) + emb_b[...]

    scale = 1.0 / math.sqrt(head_dim)

    # Per-head 0/1 feature masks built in-kernel from a lane iota (no extra DMA).
    lane = jax.lax.broadcasted_iota(jnp.int32, (1, E), 1)
    head_masks = [
        ((lane >= h * head_dim) & (lane < (h + 1) * head_dim)).astype(jnp.float32)
        for h in range(num_heads)
    ]

    # --- self-attention layer (MHA -> residual -> LayerNorm) ----------------
    def attn_layer(xin2, wqkv, bqkv, wo, bo, g, beta):
        # Fused QKV projection: one MXU matmul.
        qkv = jnp.dot(xin2, wqkv[...], preferred_element_type=jnp.float32) + bqkv[...]
        q3 = (qkv[:, 0:E] * scale).reshape(B, S, E)   # softmax scale folded here
        k3 = qkv[:, E:2 * E].reshape(B, S, E)
        v3 = qkv[:, 2 * E:3 * E].reshape(B, S, E)

        ctx3 = jnp.zeros((B, S, E), jnp.float32)
        for m in head_masks:  # static unroll (num_heads is tiny)
            s = jnp.einsum('bqd,bkd->bqk', q3 * m, k3,
                           preferred_element_type=jnp.float32)
            s = s - jnp.max(s, axis=-1, keepdims=True)
            p = jnp.exp(s)
            p = p * pl.reciprocal(jnp.sum(p, axis=-1, keepdims=True), approx=True)
            ctx3 = ctx3 + jnp.einsum('bqk,bkd->bqd', p, v3 * m,
                                     preferred_element_type=jnp.float32)

        ctx2 = ctx3.reshape(B * S, E)
        attn_out = jnp.dot(ctx2, wo[...], preferred_element_type=jnp.float32) + bo[...]
        # TODO(synk): attention-weight / output dropout is identity (eval mode).
        y = xin2 + attn_out
        mu = jnp.mean(y, axis=-1, keepdims=True)
        var = jnp.mean((y - mu) ** 2, axis=-1, keepdims=True)
        yn = (y - mu) * jax.lax.rsqrt(var + 1e-5)
        return yn * g[...] + beta[...]

    h2 = attn_layer(h2, a1_wqkv, a1_bqkv, a1_wo, a1_bo, a1_g, a1_beta)
    h2 = attn_layer(h2, a2_wqkv, a2_bqkv, a2_wo, a2_bo, a2_g, a2_beta)

    # --- Elman RNN (tanh) + mean over time -----------------------------------
    H = whh.shape[0]
    # Input projection + both biases hoisted out of the recurrence.
    xi = jnp.dot(h2, wih[...], preferred_element_type=jnp.float32) + bih[...] + bhh[...]
    xi3 = xi.reshape(B, S, H)
    whh_m = whh[...]
    hstate = jnp.zeros((B, H), jnp.float32)
    acc = jnp.zeros((B, H), jnp.float32)
    for t in range(S):  # recurrence is inherently serial; static unroll (S=8)
        pre = xi3[:, t, :] + jnp.dot(hstate, whh_m,
                                     preferred_element_type=jnp.float32)
        hstate = jnp.tanh(pre)
        acc = acc + hstate
    r = acc * (1.0 / float(S))

    # --- FFN stack + output linear -------------------------------------------
    r = jnp.maximum(jnp.dot(r, f1w[...], preferred_element_type=jnp.float32) + f1b[...], 0.0)
    r = jnp.maximum(jnp.dot(r, f2w[...], preferred_element_type=jnp.float32) + f2b[...], 0.0)
    r = jnp.maximum(jnp.dot(r, f3w[...], preferred_element_type=jnp.float32) + f3b[...], 0.0)
    o_ref[...] = jnp.dot(r, ow[...], preferred_element_type=jnp.float32) + ob[...]


# ----------------------------------------------------------------------------
# Wrapper: single fused pallas_call (no grid -> whole arrays resident in VMEM).
# ----------------------------------------------------------------------------
def _fuse_qkv(attn):
    wq, wk, wv, bq, bk, bv, wo, bo, g, beta = attn
    wqkv = jnp.concatenate([wq, wk, wv], axis=1)   # (E, 3E)
    bqkv = jnp.concatenate([bq, bk, bv], axis=1)   # (1, 3E)
    return wqkv, bqkv, wo, bo, g, beta


def language_model_forward(x, params, num_heads=2):
    B, S, V = x.shape
    E = params["emb_w"].shape[1]
    head_dim = E // num_heads

    args = (
        x, params["emb_w"], params["emb_b"],
        *_fuse_qkv(params["attn1"]),
        *_fuse_qkv(params["attn2"]),
        params["rnn_wih"], params["rnn_whh"], params["rnn_bih"], params["rnn_bhh"],
        params["ffn1_w"], params["ffn1_b"],
        params["ffn2_w"], params["ffn2_b"],
        params["ffn3_w"], params["ffn3_b"],
        params["out_w"], params["out_b"],
    )

    kernel = functools.partial(
        _lm_fused_kernel, batch=B, seq=S, num_heads=num_heads, head_dim=head_dim)

    return pl.pallas_call(
        kernel,
        out_shape=jax.ShapeDtypeStruct((B, V), jnp.float32),
        compiler_params=pltpu.CompilerParams(vmem_limit_bytes=32 * 1024 * 1024),
    )(*args)


# ----------------------------------------------------------------------------
# Parameter construction (deterministic, PyTorch-style uniform init).
# Weights are stored already transposed to (in, out); biases as (1, out).
# ----------------------------------------------------------------------------
def _uniform(key, shape, fan_in):
    bound = 1.0 / math.sqrt(fan_in)
    return jax.random.uniform(key, shape, jnp.float32, -bound, bound)


def init_params(key, vocab_size, embedding_dim, num_heads,
                rnn_hidden_size, ffn_hidden_size):
    keys = iter(jax.random.split(key, 64))
    p = {}
    p["emb_w"] = _uniform(next(keys), (vocab_size, embedding_dim), vocab_size)
    p["emb_b"] = _uniform(next(keys), (1, embedding_dim), vocab_size)

    def attn_params():
        E = embedding_dim
        return (
            _uniform(next(keys), (E, E), E),   # wq
            _uniform(next(keys), (E, E), E),   # wk
            _uniform(next(keys), (E, E), E),   # wv
            _uniform(next(keys), (1, E), E),   # bq
            _uniform(next(keys), (1, E), E),   # bk
            _uniform(next(keys), (1, E), E),   # bv
            _uniform(next(keys), (E, E), E),   # out proj w
            _uniform(next(keys), (1, E), E),   # out proj b
            jnp.ones((1, E), jnp.float32),     # layernorm gamma
            jnp.zeros((1, E), jnp.float32),    # layernorm beta
        )

    p["attn1"] = attn_params()
    p["attn2"] = attn_params()

    E, H = embedding_dim, rnn_hidden_size
    p["rnn_wih"] = _uniform(next(keys), (E, H), H)
    p["rnn_whh"] = _uniform(next(keys), (H, H), H)
    p["rnn_bih"] = _uniform(next(keys), (1, H), H)
    p["rnn_bhh"] = _uniform(next(keys), (1, H), H)

    F = ffn_hidden_size
    p["ffn1_w"] = _uniform(next(keys), (H, F), H)
    p["ffn1_b"] = _uniform(next(keys), (1, F), H)
    p["ffn2_w"] = _uniform(next(keys), (F, F), F)
    p["ffn2_b"] = _uniform(next(keys), (1, F), F)
    p["ffn3_w"] = _uniform(next(keys), (F, F), F)
    p["ffn3_b"] = _uniform(next(keys), (1, F), F)

    p["out_w"] = _uniform(next(keys), (F, vocab_size), F)
    p["out_b"] = _uniform(next(keys), (1, vocab_size), F)
    return p


if __name__ == "__main__":
    VOCAB = 32
    EMB = 30
    HEADS = 2
    RNN_H = 64
    FFN_H = 128
    B, S = 2, 8

    root = jax.random.PRNGKey(0)
    k_x, k_p = jax.random.split(root)
    x = jax.random.normal(k_x, (B, S, VOCAB), jnp.float32)
    params = init_params(k_p, VOCAB, EMB, HEADS, RNN_H, FFN_H)

    out = language_model_forward(x, params, num_heads=HEADS)
    out = jax.block_until_ready(out)
    assert out.shape == (B, VOCAB), out.shape
    assert bool(jnp.all(jnp.isfinite(out)))
    print("KERNEL_OK")
</pallas_src>

<mosaic_0001>
module attributes {stable_mosaic.version = 11 : i64} {
  func.func @_lm_fused_kernel(%arg0: memref<2x8x32xf32, #tpu.memory_space<vmem>>, %arg1: memref<32x30xf32, #tpu.memory_space<vmem>>, %arg2: memref<1x30xf32, #tpu.memory_space<vmem>>, %arg3: memref<30x90xf32, #tpu.memory_space<vmem>>, %arg4: memref<1x90xf32, #tpu.memory_space<vmem>>, %arg5: memref<30x30xf32, #tpu.memory_space<vmem>>, %arg6: memref<1x30xf32, #tpu.memory_space<vmem>>, %arg7: memref<1x30xf32, #tpu.memory_space<vmem>>, %arg8: memref<1x30xf32, #tpu.memory_space<vmem>>, %arg9: memref<30x90xf32, #tpu.memory_space<vmem>>, %arg10: memref<1x90xf32, #tpu.memory_space<vmem>>, %arg11: memref<30x30xf32, #tpu.memory_space<vmem>>, %arg12: memref<1x30xf32, #tpu.memory_space<vmem>>, %arg13: memref<1x30xf32, #tpu.memory_space<vmem>>, %arg14: memref<1x30xf32, #tpu.memory_space<vmem>>, %arg15: memref<30x64xf32, #tpu.memory_space<vmem>>, %arg16: memref<64x64xf32, #tpu.memory_space<vmem>>, %arg17: memref<1x64xf32, #tpu.memory_space<vmem>>, %arg18: memref<1x64xf32, #tpu.memory_space<vmem>>, %arg19: memref<64x128xf32, #tpu.memory_space<vmem>>, %arg20: memref<1x128xf32, #tpu.memory_space<vmem>>, %arg21: memref<128x128xf32, #tpu.memory_space<vmem>>, %arg22: memref<1x128xf32, #tpu.memory_space<vmem>>, %arg23: memref<128x128xf32, #tpu.memory_space<vmem>>, %arg24: memref<1x128xf32, #tpu.memory_space<vmem>>, %arg25: memref<128x32xf32, #tpu.memory_space<vmem>>, %arg26: memref<1x32xf32, #tpu.memory_space<vmem>>, %arg27: memref<2x32xf32, #tpu.memory_space<vmem>>) attributes {dimension_semantics = [], scalar_prefetch = 0 : i64, scratch_operands = 0 : i64, tpu.core_type = #tpu.core_type<tc>} {
    %c0 = arith.constant 0 : index
    %c0_0 = arith.constant 0 : index
    %c0_1 = arith.constant 0 : index
    %0 = vector.load %arg0[%c0, %c0_0, %c0_1] : memref<2x8x32xf32, #tpu.memory_space<vmem>>, vector<2x8x32xf32>
    %1 = vector.shape_cast %0 : vector<2x8x32xf32> to vector<16x32xf32>
    %c0_2 = arith.constant 0 : index
    %c0_3 = arith.constant 0 : index
    %2 = vector.load %arg1[%c0_2, %c0_3] : memref<32x30xf32, #tpu.memory_space<vmem>>, vector<32x30xf32>
    %cst = arith.constant dense<0.000000e+00> : vector<16x30xf32>
    %3 = tpu.matmul %1, %2, %cst {dimension_numbers = #tpu.dot_dimension_numbers<[1], [0], [0], [1], [0, 0, 1, 1], [], []>} : vector<16x32xf32>, vector<32x30xf32>, vector<16x30xf32> -> vector<16x30xf32>
    %c0_4 = arith.constant 0 : index
    %c0_5 = arith.constant 0 : index
    %4 = vector.load %arg2[%c0_4, %c0_5] : memref<1x30xf32, #tpu.memory_space<vmem>>, vector<1x30xf32>
    %5 = vector.broadcast %4 : vector<1x30xf32> to vector<16x30xf32>
    %6 = arith.addf %3, %5 : vector<16x30xf32>
    %7 = tpu.iota {dimensions = array<i32: 1>} : vector<1x30xi32>
    %c0_i32 = arith.constant 0 : i32
    %8 = vector.broadcast %c0_i32 : i32 to vector<1x30xi32>
    %9 = arith.cmpi sge, %7, %8 : vector<1x30xi32>
    %c15_i32 = arith.constant 15 : i32
    %10 = vector.broadcast %c15_i32 : i32 to vector<1x30xi32>
    %11 = arith.cmpi slt, %7, %10 : vector<1x30xi32>
    %12 = arith.andi %9, %11 : vector<1x30xi1>
    %13 = arith.extui %12 : vector<1x30xi1> to vector<1x30xi32>
    %14 = arith.sitofp %13 : vector<1x30xi32> to vector<1x30xf32>
    %c15_i32_6 = arith.constant 15 : i32
    %15 = vector.broadcast %c15_i32_6 : i32 to vector<1x30xi32>
    %16 = arith.cmpi sge, %7, %15 : vector<1x30xi32>
    %c30_i32 = arith.constant 30 : i32
    %17 = vector.broadcast %c30_i32 : i32 to vector<1x30xi32>
    %18 = arith.cmpi slt, %7, %17 : vector<1x30xi32>
    %19 = arith.andi %16, %18 : vector<1x30xi1>
    %20 = arith.extui %19 : vector<1x30xi1> to vector<1x30xi32>
    %21 = arith.sitofp %20 : vector<1x30xi32> to vector<1x30xf32>
    %c0_7 = arith.constant 0 : index
    %c0_8 = arith.constant 0 : index
    %22 = vector.load %arg3[%c0_7, %c0_8] : memref<30x90xf32, #tpu.memory_space<vmem>>, vector<30x90xf32>
    %cst_9 = arith.constant dense<0.000000e+00> : vector<16x90xf32>
    %23 = tpu.matmul %6, %22, %cst_9 {dimension_numbers = #tpu.dot_dimension_numbers<[1], [0], [0], [1], [0, 0, 1, 1], [], []>} : vector<16x30xf32>, vector<30x90xf32>, vector<16x90xf32> -> vector<16x90xf32>
    %c0_10 = arith.constant 0 : index
    %c0_11 = arith.constant 0 : index
    %24 = vector.load %arg4[%c0_10, %c0_11] : memref<1x90xf32, #tpu.memory_space<vmem>>, vector<1x90xf32>
    %25 = vector.broadcast %24 : vector<1x90xf32> to vector<16x90xf32>
    %26 = arith.addf %23, %25 : vector<16x90xf32>
    %27 = vector.extract_strided_slice %26 {offsets = [0, 0], sizes = [16, 30], strides = [1, 1]} : vector<16x90xf32> to vector<16x30xf32>
    %cst_12 = arith.constant 0.258198887 : f32
    %28 = vector.broadcast %cst_12 : f32 to vector<16x30xf32>
    %29 = arith.mulf %27, %28 : vector<16x30xf32>
    %30 = vector.shape_cast %29 : vector<16x30xf32> to vector<2x8x30xf32>
    %31 = vector.extract_strided_slice %26 {offsets = [0, 30], sizes = [16, 30], strides = [1, 1]} : vector<16x90xf32> to vector<16x30xf32>
    %32 = vector.shape_cast %31 : vector<16x30xf32> to vector<2x8x30xf32>
    %33 = vector.extract_strided_slice %26 {offsets = [0, 60], sizes = [16, 30], strides = [1, 1]} : vector<16x90xf32> to vector<16x30xf32>
    %34 = vector.shape_cast %33 : vector<16x30xf32> to vector<2x8x30xf32>
    %cst_13 = arith.constant 0.000000e+00 : f32
    %35 = vector.broadcast %cst_13 : f32 to vector<2x8x30xf32>
    %36 = vector.shape_cast %14 : vector<1x30xf32> to vector<1x1x30xf32>
    %37 = vector.broadcast %36 : vector<1x1x30xf32> to vector<2x8x30xf32>
    %38 = arith.mulf %30, %37 : vector<2x8x30xf32>
    "tpu.trace_start"() <{level = 10 : i32, message = "bqd,bkd->bqk"}> : () -> ()
    %cst_14 = arith.constant dense<0.000000e+00> : vector<2x8x8xf32>
    %39 = tpu.matmul %38, %32, %cst_14 {dimension_numbers = #tpu.dot_dimension_numbers<[2], [2], [1], [1], [0, 0, 0, 1, 1, 1], [0], [0]>} : vector<2x8x30xf32>, vector<2x8x30xf32>, vector<2x8x8xf32> -> vector<2x8x8xf32>
    "tpu.trace_stop"() : () -> ()
    %cst_15 = arith.constant dense<0xFF800000> : vector<2x8xf32>
    %40 = vector.multi_reduction <maximumf>, %39, %cst_15 [2] : vector<2x8x8xf32> to vector<2x8xf32>
    %41 = vector.shape_cast %40 : vector<2x8xf32> to vector<2x8x1xf32>
    %42 = vector.broadcast %41 : vector<2x8x1xf32> to vector<2x8x8xf32>
    %43 = arith.subf %39, %42 : vector<2x8x8xf32>
    %44 = math.exp %43 : vector<2x8x8xf32>
    %cst_16 = arith.constant dense<0.000000e+00> : vector<2x8xf32>
    %45 = vector.multi_reduction <add>, %44, %cst_16 [2] : vector<2x8x8xf32> to vector<2x8xf32>
    %46 = vector.shape_cast %45 : vector<2x8xf32> to vector<2x8x1xf32>
    %47 = tpu.reciprocal %46 {approx = true} : vector<2x8x1xf32> -> vector<2x8x1xf32>
    %48 = vector.broadcast %47 : vector<2x8x1xf32> to vector<2x8x8xf32>
    %49 = arith.mulf %44, %48 : vector<2x8x8xf32>
    %50 = vector.shape_cast %14 : vector<1x30xf32> to vector<1x1x30xf32>
    %51 = vector.broadcast %50 : vector<1x1x30xf32> to vector<2x8x30xf32>
    %52 = arith.mulf %34, %51 : vector<2x8x30xf32>
    "tpu.trace_start"() <{level = 10 : i32, message = "bqk,bkd->bqd"}> : () -> ()
    %cst_17 = arith.constant dense<0.000000e+00> : vector<2x8x30xf32>
    %53 = tpu.matmul %49, %52, %cst_17 {dimension_numbers = #tpu.dot_dimension_numbers<[2], [1], [1], [2], [0, 0, 0, 1, 1, 2], [0], [0]>} : vector<2x8x8xf32>, vector<2x8x30xf32>, vector<2x8x30xf32> -> vector<2x8x30xf32>
    "tpu.trace_stop"() : () -> ()
    %54 = arith.addf %35, %53 : vector<2x8x30xf32>
    %55 = vector.shape_cast %21 : vector<1x30xf32> to vector<1x1x30xf32>
    %56 = vector.broadcast %55 : vector<1x1x30xf32> to vector<2x8x30xf32>
    %57 = arith.mulf %30, %56 : vector<2x8x30xf32>
    "tpu.trace_start"() <{level = 10 : i32, message = "bqd,bkd->bqk"}> : () -> ()
    %cst_18 = arith.constant dense<0.000000e+00> : vector<2x8x8xf32>
    %58 = tpu.matmul %57, %32, %cst_18 {dimension_numbers = #tpu.dot_dimension_numbers<[2], [2], [1], [1], [0, 0, 0, 1, 1, 1], [0], [0]>} : vector<2x8x30xf32>, vector<2x8x30xf32>, vector<2x8x8xf32> -> vector<2x8x8xf32>
    "tpu.trace_stop"() : () -> ()
    %cst_19 = arith.constant dense<0xFF800000> : vector<2x8xf32>
    %59 = vector.multi_reduction <maximumf>, %58, %cst_19 [2] : vector<2x8x8xf32> to vector<2x8xf32>
    %60 = vector.shape_cast %59 : vector<2x8xf32> to vector<2x8x1xf32>
    %61 = vector.broadcast %60 : vector<2x8x1xf32> to vector<2x8x8xf32>
    %62 = arith.subf %58, %61 : vector<2x8x8xf32>
    %63 = math.exp %62 : vector<2x8x8xf32>
    %cst_20 = arith.constant dense<0.000000e+00> : vector<2x8xf32>
    %64 = vector.multi_reduction <add>, %63, %cst_20 [2] : vector<2x8x8xf32> to vector<2x8xf32>
    %65 = vector.shape_cast %64 : vector<2x8xf32> to vector<2x8x1xf32>
    %66 = tpu.reciprocal %65 {approx = true} : vector<2x8x1xf32> -> vector<2x8x1xf32>
    %67 = vector.broadcast %66 : vector<2x8x1xf32> to vector<2x8x8xf32>
    %68 = arith.mulf %63, %67 : vector<2x8x8xf32>
    %69 = vector.shape_cast %21 : vector<1x30xf32> to vector<1x1x30xf32>
    %70 = vector.broadcast %69 : vector<1x1x30xf32> to vector<2x8x30xf32>
    %71 = arith.mulf %34, %70 : vector<2x8x30xf32>
    "tpu.trace_start"() <{level = 10 : i32, message = "bqk,bkd->bqd"}> : () -> ()
    %cst_21 = arith.constant dense<0.000000e+00> : vector<2x8x30xf32>
    %72 = tpu.matmul %68, %71, %cst_21 {dimension_numbers = #tpu.dot_dimension_numbers<[2], [1], [1], [2], [0, 0, 0, 1, 1, 2], [0], [0]>} : vector<2x8x8xf32>, vector<2x8x30xf32>, vector<2x8x30xf32> -> vector<2x8x30xf32>
    "tpu.trace_stop"() : () -> ()
    %73 = arith.addf %54, %72 : vector<2x8x30xf32>
    %74 = vector.shape_cast %73 : vector<2x8x30xf32> to vector<16x30xf32>
    %c0_22 = arith.constant 0 : index
    %c0_23 = arith.constant 0 : index
    %75 = vector.load %arg5[%c0_22, %c0_23] : memref<30x30xf32, #tpu.memory_space<vmem>>, vector<30x30xf32>
    %cst_24 = arith.constant dense<0.000000e+00> : vector<16x30xf32>
    %76 = tpu.matmul %74, %75, %cst_24 {dimension_numbers = #tpu.dot_dimension_numbers<[1], [0], [0], [1], [0, 0, 1, 1], [], []>} : vector<16x30xf32>, vector<30x30xf32>, vector<16x30xf32> -> vector<16x30xf32>
    %c0_25 = arith.constant 0 : index
    %c0_26 = arith.constant 0 : index
    %77 = vector.load %arg6[%c0_25, %c0_26] : memref<1x30xf32, #tpu.memory_space<vmem>>, vector<1x30xf32>
    %78 = vector.broadcast %77 : vector<1x30xf32> to vector<16x30xf32>
    %79 = arith.addf %76, %78 : vector<16x30xf32>
    %80 = arith.addf %6, %79 : vector<16x30xf32>
    %cst_27 = arith.constant dense<0.000000e+00> : vector<16xf32>
    %81 = vector.multi_reduction <add>, %80, %cst_27 [1] : vector<16x30xf32> to vector<16xf32>
    %82 = vector.shape_cast %81 : vector<16xf32> to vector<16x1xf32>
    %cst_28 = arith.constant 3.000000e+01 : f32
    %83 = vector.broadcast %cst_28 : f32 to vector<16x1xf32>
    %84 = arith.divf %82, %83 : vector<16x1xf32>
    %85 = vector.broadcast %84 : vector<16x1xf32> to vector<16x30xf32>
    %86 = arith.subf %80, %85 : vector<16x30xf32>
    %87 = arith.mulf %86, %86 : vector<16x30xf32>
    %cst_29 = arith.constant dense<0.000000e+00> : vector<16xf32>
    %88 = vector.multi_reduction <add>, %87, %cst_29 [1] : vector<16x30xf32> to vector<16xf32>
    %89 = vector.shape_cast %88 : vector<16xf32> to vector<16x1xf32>
    %cst_30 = arith.constant 3.000000e+01 : f32
    %90 = vector.broadcast %cst_30 : f32 to vector<16x1xf32>
    %91 = arith.divf %89, %90 : vector<16x1xf32>
    %92 = vector.broadcast %84 : vector<16x1xf32> to vector<16x30xf32>
    %93 = arith.subf %80, %92 : vector<16x30xf32>
    %cst_31 = arith.constant 9.99999974E-6 : f32
    %94 = vector.broadcast %cst_31 : f32 to vector<16x1xf32>
    %95 = arith.addf %91, %94 : vector<16x1xf32>
    %96 = math.rsqrt %95 : vector<16x1xf32>
    %97 = vector.broadcast %96 : vector<16x1xf32> to vector<16x30xf32>
    %98 = arith.mulf %93, %97 : vector<16x30xf32>
    %c0_32 = arith.constant 0 : index
    %c0_33 = arith.constant 0 : index
    %99 = vector.load %arg7[%c0_32, %c0_33] : memref<1x30xf32, #tpu.memory_space<vmem>>, vector<1x30xf32>
    %100 = vector.broadcast %99 : vector<1x30xf32> to vector<16x30xf32>
    %101 = arith.mulf %98, %100 : vector<16x30xf32>
    %c0_34 = arith.constant 0 : index
    %c0_35 = arith.constant 0 : index
    %102 = vector.load %arg8[%c0_34, %c0_35] : memref<1x30xf32, #tpu.memory_space<vmem>>, vector<1x30xf32>
    %103 = vector.broadcast %102 : vector<1x30xf32> to vector<16x30xf32>
    %104 = arith.addf %101, %103 : vector<16x30xf32>
    %c0_36 = arith.constant 0 : index
    %c0_37 = arith.constant 0 : index
    %105 = vector.load %arg9[%c0_36, %c0_37] : memref<30x90xf32, #tpu.memory_space<vmem>>, vector<30x90xf32>
    %cst_38 = arith.constant dense<0.000000e+00> : vector<16x90xf32>
    %106 = tpu.matmul %104, %105, %cst_38 {dimension_numbers = #tpu.dot_dimension_numbers<[1], [0], [0], [1], [0, 0, 1, 1], [], []>} : vector<16x30xf32>, vector<30x90xf32>, vector<16x90xf32> -> vector<16x90xf32>
    %c0_39 = arith.constant 0 : index
    %c0_40 = arith.constant 0 : index
    %107 = vector.load %arg10[%c0_39, %c0_40] : memref<1x90xf32, #tpu.memory_space<vmem>>, vector<1x90xf32>
    %108 = vector.broadcast %107 : vector<1x90xf32> to vector<16x90xf32>
    %109 = arith.addf %106, %108 : vector<16x90xf32>
    %110 = vector.extract_strided_slice %109 {offsets = [0, 0], sizes = [16, 30], strides = [1, 1]} : vector<16x90xf32> to vector<16x30xf32>
    %cst_41 = arith.constant 0.258198887 : f32
    %111 = vector.broadcast %cst_41 : f32 to vector<16x30xf32>
    %112 = arith.mulf %110, %111 : vector<16x30xf32>
    %113 = vector.shape_cast %112 : vector<16x30xf32> to vector<2x8x30xf32>
    %114 = vector.extract_strided_slice %109 {offsets = [0, 30], sizes = [16, 30], strides = [1, 1]} : vector<16x90xf32> to vector<16x30xf32>
    %115 = vector.shape_cast %114 : vector<16x30xf32> to vector<2x8x30xf32>
    %116 = vector.extract_strided_slice %109 {offsets = [0, 60], sizes = [16, 30], strides = [1, 1]} : vector<16x90xf32> to vector<16x30xf32>
    %117 = vector.shape_cast %116 : vector<16x30xf32> to vector<2x8x30xf32>
    %cst_42 = arith.constant 0.000000e+00 : f32
    %118 = vector.broadcast %cst_42 : f32 to vector<2x8x30xf32>
    %119 = vector.shape_cast %14 : vector<1x30xf32> to vector<1x1x30xf32>
    %120 = vector.broadcast %119 : vector<1x1x30xf32> to vector<2x8x30xf32>
    %121 = arith.mulf %113, %120 : vector<2x8x30xf32>
    "tpu.trace_start"() <{level = 10 : i32, message = "bqd,bkd->bqk"}> : () -> ()
    %cst_43 = arith.constant dense<0.000000e+00> : vector<2x8x8xf32>
    %122 = tpu.matmul %121, %115, %cst_43 {dimension_numbers = #tpu.dot_dimension_numbers<[2], [2], [1], [1], [0, 0, 0, 1, 1, 1], [0], [0]>} : vector<2x8x30xf32>, vector<2x8x30xf32>, vector<2x8x8xf32> -> vector<2x8x8xf32>
    "tpu.trace_stop"() : () -> ()
    %cst_44 = arith.constant dense<0xFF800000> : vector<2x8xf32>
    %123 = vector.multi_reduction <maximumf>, %122, %cst_44 [2] : vector<2x8x8xf32> to vector<2x8xf32>
    %124 = vector.shape_cast %123 : vector<2x8xf32> to vector<2x8x1xf32>
    %125 = vector.broadcast %124 : vector<2x8x1xf32> to vector<2x8x8xf32>
    %126 = arith.subf %122, %125 : vector<2x8x8xf32>
    %127 = math.exp %126 : vector<2x8x8xf32>
    %cst_45 = arith.constant dense<0.000000e+00> : vector<2x8xf32>
    %128 = vector.multi_reduction <add>, %127, %cst_45 [2] : vector<2x8x8xf32> to vector<2x8xf32>
    %129 = vector.shape_cast %128 : vector<2x8xf32> to vector<2x8x1xf32>
    %130 = tpu.reciprocal %129 {approx = true} : vector<2x8x1xf32> -> vector<2x8x1xf32>
    %131 = vector.broadcast %130 : vector<2x8x1xf32> to vector<2x8x8xf32>
    %132 = arith.mulf %127, %131 : vector<2x8x8xf32>
    %133 = vector.shape_cast %14 : vector<1x30xf32> to vector<1x1x30xf32>
    %134 = vector.broadcast %133 : vector<1x1x30xf32> to vector<2x8x30xf32>
    %135 = arith.mulf %117, %134 : vector<2x8x30xf32>
    "tpu.trace_start"() <{level = 10 : i32, message = "bqk,bkd->bqd"}> : () -> ()
    %cst_46 = arith.constant dense<0.000000e+00> : vector<2x8x30xf32>
    %136 = tpu.matmul %132, %135, %cst_46 {dimension_numbers = #tpu.dot_dimension_numbers<[2], [1], [1], [2], [0, 0, 0, 1, 1, 2], [0], [0]>} : vector<2x8x8xf32>, vector<2x8x30xf32>, vector<2x8x30xf32> -> vector<2x8x30xf32>
    "tpu.trace_stop"() : () -> ()
    %137 = arith.addf %118, %136 : vector<2x8x30xf32>
    %138 = vector.shape_cast %21 : vector<1x30xf32> to vector<1x1x30xf32>
    %139 = vector.broadcast %138 : vector<1x1x30xf32> to vector<2x8x30xf32>
    %140 = arith.mulf %113, %139 : vector<2x8x30xf32>
    "tpu.trace_start"() <{level = 10 : i32, message = "bqd,bkd->bqk"}> : () -> ()
    %cst_47 = arith.constant dense<0.000000e+00> : vector<2x8x8xf32>
    %141 = tpu.matmul %140, %115, %cst_47 {dimension_numbers = #tpu.dot_dimension_numbers<[2], [2], [1], [1], [0, 0, 0, 1, 1, 1], [0], [0]>} : vector<2x8x30xf32>, vector<2x8x30xf32>, vector<2x8x8xf32> -> vector<2x8x8xf32>
    "tpu.trace_stop"() : () -> ()
    %cst_48 = arith.constant dense<0xFF800000> : vector<2x8xf32>
    %142 = vector.multi_reduction <maximumf>, %141, %cst_48 [2] : vector<2x8x8xf32> to vector<2x8xf32>
    %143 = vector.shape_cast %142 : vector<2x8xf32> to vector<2x8x1xf32>
    %144 = vector.broadcast %143 : vector<2x8x1xf32> to vector<2x8x8xf32>
    %145 = arith.subf %141, %144 : vector<2x8x8xf32>
    %146 = math.exp %145 : vector<2x8x8xf32>
    %cst_49 = arith.constant dense<0.000000e+00> : vector<2x8xf32>
    %147 = vector.multi_reduction <add>, %146, %cst_49 [2] : vector<2x8x8xf32> to vector<2x8xf32>
    %148 = vector.shape_cast %147 : vector<2x8xf32> to vector<2x8x1xf32>
    %149 = tpu.reciprocal %148 {approx = true} : vector<2x8x1xf32> -> vector<2x8x1xf32>
    %150 = vector.broadcast %149 : vector<2x8x1xf32> to vector<2x8x8xf32>
    %151 = arith.mulf %146, %150 : vector<2x8x8xf32>
    %152 = vector.shape_cast %21 : vector<1x30xf32> to vector<1x1x30xf32>
    %153 = vector.broadcast %152 : vector<1x1x30xf32> to vector<2x8x30xf32>
    %154 = arith.mulf %117, %153 : vector<2x8x30xf32>
    "tpu.trace_start"() <{level = 10 : i32, message = "bqk,bkd->bqd"}> : () -> ()
    %cst_50 = arith.constant dense<0.000000e+00> : vector<2x8x30xf32>
    %155 = tpu.matmul %151, %154, %cst_50 {dimension_numbers = #tpu.dot_dimension_numbers<[2], [1], [1], [2], [0, 0, 0, 1, 1, 2], [0], [0]>} : vector<2x8x8xf32>, vector<2x8x30xf32>, vector<2x8x30xf32> -> vector<2x8x30xf32>
    "tpu.trace_stop"() : () -> ()
    %156 = arith.addf %137, %155 : vector<2x8x30xf32>
    %157 = vector.shape_cast %156 : vector<2x8x30xf32> to vector<16x30xf32>
    %c0_51 = arith.constant 0 : index
    %c0_52 = arith.constant 0 : index
    %158 = vector.load %arg11[%c0_51, %c0_52] : memref<30x30xf32, #tpu.memory_space<vmem>>, vector<30x30xf32>
    %cst_53 = arith.constant dense<0.000000e+00> : vector<16x30xf32>
    %159 = tpu.matmul %157, %158, %cst_53 {dimension_numbers = #tpu.dot_dimension_numbers<[1], [0], [0], [1], [0, 0, 1, 1], [], []>} : vector<16x30xf32>, vector<30x30xf32>, vector<16x30xf32> -> vector<16x30xf32>
    %c0_54 = arith.constant 0 : index
    %c0_55 = arith.constant 0 : index
    %160 = vector.load %arg12[%c0_54, %c0_55] : memref<1x30xf32, #tpu.memory_space<vmem>>, vector<1x30xf32>
    %161 = vector.broadcast %160 : vector<1x30xf32> to vector<16x30xf32>
    %162 = arith.addf %159, %161 : vector<16x30xf32>
    %163 = arith.addf %104, %162 : vector<16x30xf32>
    %cst_56 = arith.constant dense<0.000000e+00> : vector<16xf32>
    %164 = vector.multi_reduction <add>, %163, %cst_56 [1] : vector<16x30xf32> to vector<16xf32>
    %165 = vector.shape_cast %164 : vector<16xf32> to vector<16x1xf32>
    %cst_57 = arith.constant 3.000000e+01 : f32
    %166 = vector.broadcast %cst_57 : f32 to vector<16x1xf32>
    %167 = arith.divf %165, %166 : vector<16x1xf32>
    %168 = vector.broadcast %167 : vector<16x1xf32> to vector<16x30xf32>
    %169 = arith.subf %163, %168 : vector<16x30xf32>
    %170 = arith.mulf %169, %169 : vector<16x30xf32>
    %cst_58 = arith.constant dense<0.000000e+00> : vector<16xf32>
    %171 = vector.multi_reduction <add>, %170, %cst_58 [1] : vector<16x30xf32> to vector<16xf32>
    %172 = vector.shape_cast %171 : vector<16xf32> to vector<16x1xf32>
    %cst_59 = arith.constant 3.000000e+01 : f32
    %173 = vector.broadcast %cst_59 : f32 to vector<16x1xf32>
    %174 = arith.divf %172, %173 : vector<16x1xf32>
    %175 = vector.broadcast %167 : vector<16x1xf32> to vector<16x30xf32>
    %176 = arith.subf %163, %175 : vector<16x30xf32>
    %cst_60 = arith.constant 9.99999974E-6 : f32
    %177 = vector.broadcast %cst_60 : f32 to vector<16x1xf32>
    %178 = arith.addf %174, %177 : vector<16x1xf32>
    %179 = math.rsqrt %178 : vector<16x1xf32>
    %180 = vector.broadcast %179 : vector<16x1xf32> to vector<16x30xf32>
    %181 = arith.mulf %176, %180 : vector<16x30xf32>
    %c0_61 = arith.constant 0 : index
    %c0_62 = arith.constant 0 : index
    %182 = vector.load %arg13[%c0_61, %c0_62] : memref<1x30xf32, #tpu.memory_space<vmem>>, vector<1x30xf32>
    %183 = vector.broadcast %182 : vector<1x30xf32> to vector<16x30xf32>
    %184 = arith.mulf %181, %183 : vector<16x30xf32>
    %c0_63 = arith.constant 0 : index
    %c0_64 = arith.constant 0 : index
    %185 = vector.load %arg14[%c0_63, %c0_64] : memref<1x30xf32, #tpu.memory_space<vmem>>, vector<1x30xf32>
    %186 = vector.broadcast %185 : vector<1x30xf32> to vector<16x30xf32>
    %187 = arith.addf %184, %186 : vector<16x30xf32>
    %c0_65 = arith.constant 0 : index
    %c0_66 = arith.constant 0 : index
    %188 = vector.load %arg15[%c0_65, %c0_66] : memref<30x64xf32, #tpu.memory_space<vmem>>, vector<30x64xf32>
    %cst_67 = arith.constant dense<0.000000e+00> : vector<16x64xf32>
    %189 = tpu.matmul %187, %188, %cst_67 {dimension_numbers = #tpu.dot_dimension_numbers<[1], [0], [0], [1], [0, 0, 1, 1], [], []>} : vector<16x30xf32>, vector<30x64xf32>, vector<16x64xf32> -> vector<16x64xf32>
    %c0_68 = arith.constant 0 : index
    %c0_69 = arith.constant 0 : index
    %190 = vector.load %arg17[%c0_68, %c0_69] : memref<1x64xf32, #tpu.memory_space<vmem>>, vector<1x64xf32>
    %191 = vector.broadcast %190 : vector<1x64xf32> to vector<16x64xf32>
    %192 = arith.addf %189, %191 : vector<16x64xf32>
    %c0_70 = arith.constant 0 : index
    %c0_71 = arith.constant 0 : index
    %193 = vector.load %arg18[%c0_70, %c0_71] : memref<1x64xf32, #tpu.memory_space<vmem>>, vector<1x64xf32>
    %194 = vector.broadcast %193 : vector<1x64xf32> to vector<16x64xf32>
    %195 = arith.addf %192, %194 : vector<16x64xf32>
    %196 = vector.shape_cast %195 : vector<16x64xf32> to vector<2x8x64xf32>
    %c0_72 = arith.constant 0 : index
    %c0_73 = arith.constant 0 : index
    %197 = vector.load %arg16[%c0_72, %c0_73] : memref<64x64xf32, #tpu.memory_space<vmem>>, vector<64x64xf32>
    %cst_74 = arith.constant 0.000000e+00 : f32
    %198 = vector.broadcast %cst_74 : f32 to vector<2x64xf32>
    %cst_75 = arith.constant 0.000000e+00 : f32
    %199 = vector.broadcast %cst_75 : f32 to vector<2x64xf32>
    %200 = vector.extract_strided_slice %196 {offsets = [0, 0, 0], sizes = [2, 1, 64], strides = [1, 1, 1]} : vector<2x8x64xf32> to vector<2x1x64xf32>
    %201 = vector.shape_cast %200 : vector<2x1x64xf32> to vector<2x64xf32>
    %cst_76 = arith.constant dense<0.000000e+00> : vector<2x64xf32>
    %202 = tpu.matmul %198, %197, %cst_76 {dimension_numbers = #tpu.dot_dimension_numbers<[1], [0], [0], [1], [0, 0, 1, 1], [], []>} : vector<2x64xf32>, vector<64x64xf32>, vector<2x64xf32> -> vector<2x64xf32>
    %203 = arith.addf %201, %202 : vector<2x64xf32>
    %204 = math.tanh %203 : vector<2x64xf32>
    %205 = arith.addf %199, %204 : vector<2x64xf32>
    %206 = vector.extract_strided_slice %196 {offsets = [0, 1, 0], sizes = [2, 1, 64], strides = [1, 1, 1]} : vector<2x8x64xf32> to vector<2x1x64xf32>
    %207 = vector.shape_cast %206 : vector<2x1x64xf32> to vector<2x64xf32>
    %cst_77 = arith.constant dense<0.000000e+00> : vector<2x64xf32>
    %208 = tpu.matmul %204, %197, %cst_77 {dimension_numbers = #tpu.dot_dimension_numbers<[1], [0], [0], [1], [0, 0, 1, 1], [], []>} : vector<2x64xf32>, vector<64x64xf32>, vector<2x64xf32> -> vector<2x64xf32>
    %209 = arith.addf %207, %208 : vector<2x64xf32>
    %210 = math.tanh %209 : vector<2x64xf32>
    %211 = arith.addf %205, %210 : vector<2x64xf32>
    %212 = vector.extract_strided_slice %196 {offsets = [0, 2, 0], sizes = [2, 1, 64], strides = [1, 1, 1]} : vector<2x8x64xf32> to vector<2x1x64xf32>
    %213 = vector.shape_cast %212 : vector<2x1x64xf32> to vector<2x64xf32>
    %cst_78 = arith.constant dense<0.000000e+00> : vector<2x64xf32>
    %214 = tpu.matmul %210, %197, %cst_78 {dimension_numbers = #tpu.dot_dimension_numbers<[1], [0], [0], [1], [0, 0, 1, 1], [], []>} : vector<2x64xf32>, vector<64x64xf32>, vector<2x64xf32> -> vector<2x64xf32>
    %215 = arith.addf %213, %214 : vector<2x64xf32>
    %216 = math.tanh %215 : vector<2x64xf32>
    %217 = arith.addf %211, %216 : vector<2x64xf32>
    %218 = vector.extract_strided_slice %196 {offsets = [0, 3, 0], sizes = [2, 1, 64], strides = [1, 1, 1]} : vector<2x8x64xf32> to vector<2x1x64xf32>
    %219 = vector.shape_cast %218 : vector<2x1x64xf32> to vector<2x64xf32>
    %cst_79 = arith.constant dense<0.000000e+00> : vector<2x64xf32>
    %220 = tpu.matmul %216, %197, %cst_79 {dimension_numbers = #tpu.dot_dimension_numbers<[1], [0], [0], [1], [0, 0, 1, 1], [], []>} : vector<2x64xf32>, vector<64x64xf32>, vector<2x64xf32> -> vector<2x64xf32>
    %221 = arith.addf %219, %220 : vector<2x64xf32>
    %222 = math.tanh %221 : vector<2x64xf32>
    %223 = arith.addf %217, %222 : vector<2x64xf32>
    %224 = vector.extract_strided_slice %196 {offsets = [0, 4, 0], sizes = [2, 1, 64], strides = [1, 1, 1]} : vector<2x8x64xf32> to vector<2x1x64xf32>
    %225 = vector.shape_cast %224 : vector<2x1x64xf32> to vector<2x64xf32>
    %cst_80 = arith.constant dense<0.000000e+00> : vector<2x64xf32>
    %226 = tpu.matmul %222, %197, %cst_80 {dimension_numbers = #tpu.dot_dimension_numbers<[1], [0], [0], [1], [0, 0, 1, 1], [], []>} : vector<2x64xf32>, vector<64x64xf32>, vector<2x64xf32> -> vector<2x64xf32>
    %227 = arith.addf %225, %226 : vector<2x64xf32>
    %228 = math.tanh %227 : vector<2x64xf32>
    %229 = arith.addf %223, %228 : vector<2x64xf32>
    %230 = vector.extract_strided_slice %196 {offsets = [0, 5, 0], sizes = [2, 1, 64], strides = [1, 1, 1]} : vector<2x8x64xf32> to vector<2x1x64xf32>
    %231 = vector.shape_cast %230 : vector<2x1x64xf32> to vector<2x64xf32>
    %cst_81 = arith.constant dense<0.000000e+00> : vector<2x64xf32>
    %232 = tpu.matmul %228, %197, %cst_81 {dimension_numbers = #tpu.dot_dimension_numbers<[1], [0], [0], [1], [0, 0, 1, 1], [], []>} : vector<2x64xf32>, vector<64x64xf32>, vector<2x64xf32> -> vector<2x64xf32>
    %233 = arith.addf %231, %232 : vector<2x64xf32>
    %234 = math.tanh %233 : vector<2x64xf32>
    %235 = arith.addf %229, %234 : vector<2x64xf32>
    %236 = vector.extract_strided_slice %196 {offsets = [0, 6, 0], sizes = [2, 1, 64], strides = [1, 1, 1]} : vector<2x8x64xf32> to vector<2x1x64xf32>
    %237 = vector.shape_cast %236 : vector<2x1x64xf32> to vector<2x64xf32>
    %cst_82 = arith.constant dense<0.000000e+00> : vector<2x64xf32>
    %238 = tpu.matmul %234, %197, %cst_82 {dimension_numbers = #tpu.dot_dimension_numbers<[1], [0], [0], [1], [0, 0, 1, 1], [], []>} : vector<2x64xf32>, vector<64x64xf32>, vector<2x64xf32> -> vector<2x64xf32>
    %239 = arith.addf %237, %238 : vector<2x64xf32>
    %240 = math.tanh %239 : vector<2x64xf32>
    %241 = arith.addf %235, %240 : vector<2x64xf32>
    %242 = vector.extract_strided_slice %196 {offsets = [0, 7, 0], sizes = [2, 1, 64], strides = [1, 1, 1]} : vector<2x8x64xf32> to vector<2x1x64xf32>
    %243 = vector.shape_cast %242 : vector<2x1x64xf32> to vector<2x64xf32>
    %cst_83 = arith.constant dense<0.000000e+00> : vector<2x64xf32>
    %244 = tpu.matmul %240, %197, %cst_83 {dimension_numbers = #tpu.dot_dimension_numbers<[1], [0], [0], [1], [0, 0, 1, 1], [], []>} : vector<2x64xf32>, vector<64x64xf32>, vector<2x64xf32> -> vector<2x64xf32>
    %245 = arith.addf %243, %244 : vector<2x64xf32>
    %246 = math.tanh %245 : vector<2x64xf32>
    %247 = arith.addf %241, %246 : vector<2x64xf32>
    %cst_84 = arith.constant 1.250000e-01 : f32
    %248 = vector.broadcast %cst_84 : f32 to vector<2x64xf32>
    %249 = arith.mulf %247, %248 : vector<2x64xf32>
    %c0_85 = arith.constant 0 : index
    %c0_86 = arith.constant 0 : index
    %250 = vector.load %arg19[%c0_85, %c0_86] : memref<64x128xf32, #tpu.memory_space<vmem>>, vector<64x128xf32>
    %cst_87 = arith.constant dense<0.000000e+00> : vector<2x128xf32>
    %251 = tpu.matmul %249, %250, %cst_87 {dimension_numbers = #tpu.dot_dimension_numbers<[1], [0], [0], [1], [0, 0, 1, 1], [], []>} : vector<2x64xf32>, vector<64x128xf32>, vector<2x128xf32> -> vector<2x128xf32>
    %c0_88 = arith.constant 0 : index
    %c0_89 = arith.constant 0 : index
    %252 = vector.load %arg20[%c0_88, %c0_89] : memref<1x128xf32, #tpu.memory_space<vmem>>, vector<1x128xf32>
    %253 = vector.broadcast %252 : vector<1x128xf32> to vector<2x128xf32>
    %254 = arith.addf %251, %253 : vector<2x128xf32>
    %cst_90 = arith.constant 0.000000e+00 : f32
    %255 = vector.broadcast %cst_90 : f32 to vector<2x128xf32>
    %256 = arith.maximumf %254, %255 : vector<2x128xf32>
    %c0_91 = arith.constant 0 : index
    %c0_92 = arith.constant 0 : index
    %257 = vector.load %arg21[%c0_91, %c0_92] : memref<128x128xf32, #tpu.memory_space<vmem>>, vector<128x128xf32>
    %cst_93 = arith.constant dense<0.000000e+00> : vector<2x128xf32>
    %258 = tpu.matmul %256, %257, %cst_93 {dimension_numbers = #tpu.dot_dimension_numbers<[1], [0], [0], [1], [0, 0, 1, 1], [], []>} : vector<2x128xf32>, vector<128x128xf32>, vector<2x128xf32> -> vector<2x128xf32>
    %c0_94 = arith.constant 0 : index
    %c0_95 = arith.constant 0 : index
    %259 = vector.load %arg22[%c0_94, %c0_95] : memref<1x128xf32, #tpu.memory_space<vmem>>, vector<1x128xf32>
    %260 = vector.broadcast %259 : vector<1x128xf32> to vector<2x128xf32>
    %261 = arith.addf %258, %260 : vector<2x128xf32>
    %cst_96 = arith.constant 0.000000e+00 : f32
    %262 = vector.broadcast %cst_96 : f32 to vector<2x128xf32>
    %263 = arith.maximumf %261, %262 : vector<2x128xf32>
    %c0_97 = arith.constant 0 : index
    %c0_98 = arith.constant 0 : index
    %264 = vector.load %arg23[%c0_97, %c0_98] : memref<128x128xf32, #tpu.memory_space<vmem>>, vector<128x128xf32>
    %cst_99 = arith.constant dense<0.000000e+00> : vector<2x128xf32>
    %265 = tpu.matmul %263, %264, %cst_99 {dimension_numbers = #tpu.dot_dimension_numbers<[1], [0], [0], [1], [0, 0, 1, 1], [], []>} : vector<2x128xf32>, vector<128x128xf32>, vector<2x128xf32> -> vector<2x128xf32>
    %c0_100 = arith.constant 0 : index
    %c0_101 = arith.constant 0 : index
    %266 = vector.load %arg24[%c0_100, %c0_101] : memref<1x128xf32, #tpu.memory_space<vmem>>, vector<1x128xf32>
    %267 = vector.broadcast %266 : vector<1x128xf32> to vector<2x128xf32>
    %268 = arith.addf %265, %267 : vector<2x128xf32>
    %cst_102 = arith.constant 0.000000e+00 : f32
    %269 = vector.broadcast %cst_102 : f32 to vector<2x128xf32>
    %270 = arith.maximumf %268, %269 : vector<2x128xf32>
    %c0_103 = arith.constant 0 : index
    %c0_104 = arith.constant 0 : index
    %271 = vector.load %arg25[%c0_103, %c0_104] : memref<128x32xf32, #tpu.memory_space<vmem>>, vector<128x32xf32>
    %cst_105 = arith.constant dense<0.000000e+00> : vector<2x32xf32>
    %272 = tpu.matmul %270, %271, %cst_105 {dimension_numbers = #tpu.dot_dimension_numbers<[1], [0], [0], [1], [0, 0, 1, 1], [], []>} : vector<2x128xf32>, vector<128x32xf32>, vector<2x32xf32> -> vector<2x32xf32>
    %c0_106 = arith.constant 0 : index
    %c0_107 = arith.constant 0 : index
    %273 = vector.load %arg26[%c0_106, %c0_107] : memref<1x32xf32, #tpu.memory_space<vmem>>, vector<1x32xf32>
    %274 = vector.broadcast %273 : vector<1x32xf32> to vector<2x32xf32>
    %275 = arith.addf %272, %274 : vector<2x32xf32>
    %c0_108 = arith.constant 0 : index
    %c0_109 = arith.constant 0 : index
    %276 = vector.load %arg27[%c0_108, %c0_109] : memref<2x32xf32, #tpu.memory_space<vmem>>, vector<2x32xf32>
    tpu.vector_store %arg27[%c0_108, %c0_109], %275 {strides = array<i32>} : memref<2x32xf32, #tpu.memory_space<vmem>>, vector<2x32xf32>,
    return
  }
}

</mosaic_0001>

<bundles_post_ra>
// kernel: tpu_custom_call.1
= control target key start
LH: loop header
LB: loop body
LE: loop exit
PB: predicated region body
PF: predicated region fallthrough
CT: control target
= control target key end

     0   :  { %s5415_s0 = inlined_call_operand.hbm [shape: f32[2,8,32], index: 0, kind: input, shape index: {}]   ;;  %s5416_s1 = inlined_call_operand.hbm [shape: f32[32,30], index: 1, kind: input, shape index: {}]   ;;  %s5417_s2 = inlined_call_operand.vmem [shape: f32[1,30], index: 2, kind: input, shape index: {}]   ;;  %s5418_s3 = inlined_call_operand.hbm [shape: f32[30,90], index: 3, kind: input, shape index: {}]   ;;  %s5419_s4 = inlined_call_operand.vmem [shape: f32[1,90], index: 4, kind: input, shape index: {}]   ;;  %s5420_s5 = inlined_call_operand.hbm [shape: f32[30,30], index: 5, kind: input, shape index: {}]   ;;  %s5421_s6 = inlined_call_operand.vmem [shape: f32[1,30], index: 6, kind: input, shape index: {}]   ;;  %s5422_s7 = inlined_call_operand.vmem [shape: f32[1,30], index: 7, kind: input, shape index: {}]   ;;  %s5423_s8 = inlined_call_operand.vmem [shape: f32[1,30], index: 8, kind: input, shape index: {}]   ;;  %s5424_s9 = inlined_call_operand.hbm [shape: f32[30,90], index: 9, kind: input, shape index: {}]   ;;  %s5425_s10 = inlined_call_operand.vmem [shape: f32[1,90], index: 10, kind: input, shape index: {}]   ;;  %s5426_s11 = inlined_call_operand.hbm [shape: f32[30,30], index: 11, kind: input, shape index: {}]   ;;  %s5427_s12 = inlined_call_operand.hbm [shape: f32[1,30], index: 12, kind: input, shape index: {}]   ;;  %s5428_s13 = inlined_call_operand.hbm [shape: f32[1,30], index: 13, kind: input, shape index: {}]   ;;  %s5429_s14 = inlined_call_operand.hbm [shape: f32[1,30], index: 14, kind: input, shape index: {}]   ;;  %s5430_s15 = inlined_call_operand.hbm [shape: f32[30,64], index: 15, kind: input, shape index: {}]   ;;  %s5431_s16 = inlined_call_operand.vmem [shape: f32[64,64], index: 16, kind: input, shape index: {}]   ;;  %s5432_s17 = inlined_call_operand.hbm [shape: f32[1,64], index: 17, kind: input, shape index: {}]   ;;  %s5433_s18 = inlined_call_operand.hbm [shape: f32[1,64], index: 18, kind: input, shape index: {}]   ;;  %s5434_s19 = inlined_call_operand.hbm [shape: f32[64,128], index: 19, kind: input, shape index: {}]   ;;  %s5435_s20 = inlined_call_operand.hbm [shape: f32[1,128], index: 20, kind: input, shape index: {}]   ;;  %s5436_s21 = inlined_call_operand.vmem [shape: f32[128,128], index: 21, kind: input, shape index: {}]   ;;  %s5437_s22 = inlined_call_operand.vmem [shape: f32[1,128], index: 22, kind: input, shape index: {}]   ;;  %s5438_s23 = inlined_call_operand.hbm [shape: f32[128,128], index: 23, kind: input, shape index: {}]   ;;  %s5439_s24 = inlined_call_operand.vmem [shape: f32[1,128], index: 24, kind: input, shape index: {}]   ;;  %s5440_s25 = inlined_call_operand.vmem [shape: f32[128,32], index: 25, kind: input, shape index: {}]   ;;  %s5441_s26 = inlined_call_operand.vmem [shape: f32[1,32], index: 26, kind: input, shape index: {}]   ;;  %s5442_s27 = inlined_call_operand.hbm [shape: f32[2,32], index: 27, kind: output, shape index: {}]  }
   0x1   :  { %5443 = sst [smem:[#allocation36_spill]] %s5415_s0 }
   0x2   :  { %5444 = sst [smem:[#allocation37_spill]] %s5416_s1 }
   0x3   :  { %5445 = sst [smem:[#allocation38_spill]] %s5417_s2 }
   0x4   :  { %5446 = sst [smem:[#allocation39_spill]] %s5418_s3 }
   0x5   :  { %5447 = sst [smem:[#allocation40_spill]] %s5419_s4 }
   0x6   :  { %5448 = sst [smem:[#allocation41_spill]] %s5420_s5 }
   0x7   :  { %5449 = sst [smem:[#allocation42_spill]] %s5421_s6 }
   0x8   :  { %5450 = sst [smem:[#allocation43_spill]] %s5422_s7 }
   0x9   :  { %5451 = sst [smem:[#allocation44_spill]] %s5423_s8 }
   0xa   :  { %5452 = sst [smem:[#allocation45_spill]] %s5424_s9 }
   0xb   :  { %5453 = sst [smem:[#allocation46_spill]] %s5425_s10 }
   0xc   :  { %5454 = sst [smem:[#allocation47_spill]] %s5426_s11 }
   0xd   :  { %32 = vsyncpa [#allocation3], 0 }
   0xe   :  { %33 = vsyncpa [#allocation6], 0 }
   0xf   :  { %34 = vsyncpa [#allocation9], 0 }
  0x10   :  { %35 = vsyncpa [#allocation12], 0 }
  0x11   :  { %36 = vsyncpa [#allocation15], 0 }
  0x12   :  { %37 = vsyncpa [#allocation18], 0 }
  0x13   :  { %38 = vsyncpa [#allocation21], 0 }
  0x14   :  { %39 = vsyncpa [#allocation24], 0 }
  0x15   :  { %40 = vsyncpa [#allocation4], 0  ;;  %s4551_s7 = smov [#allocation5]   ;;  %s4552_s8 = smov [#allocation8]  }
  0x16   :  { %s58_s4 = sshll.u32 %s4551_s7, 4  ;;  %s86_s30 = sshll.u32 %s4552_s8, 4  ;;  %s59_s4 = int_to_ptr.vmem [resolvable:$true] %s58_s4  ;;  %s87_s30 = int_to_ptr.vmem [resolvable:$true] %s86_s30 }
  0x17   :  { %s4221_s9 = scalar_lea.vmem %s59_s4, 512  ;;  %p4226_p1 = scmp.lt.s32.totalorder %s59_s4, %s59_s4 }
  0x18   :  { %p4222_p0 = scmp.ne.s32.totalorder %s59_s4, %s4221_s9  ;;  %p4227_p2 = scmp.lt.s32.totalorder %s4221_s9, %s4221_s9 }
  0x1a   :  { %p4228_p3 = por %p4227_p2, %p4226_p1 }
  0x1c   :  { %p4229_p4 = pnand %p4228_p3, %p4222_p0 }
  0x1e   :  { %4232 = shalt.err (!%p4229_p4)
}
  0x1f   :  { %s4553_s5 = smov 128   ;;  %s4554_s28 = smov 8  }
  0x20   :  { %s5455_s29 = sld [smem:[#allocation37_spill]]  ;;  %s4241_s1 = scalar_lea.vmem %s87_s30, 512 }
  0x21   :  { %p4242_p5 = scmp.ne.s32.totalorder %s87_s30, %s4241_s1  ;;  %p4246_p6 = scmp.lt.s32.totalorder %s87_s30, %s87_s30 }
  0x22   :  { %p4247_p7 = scmp.lt.s32.totalorder %s4241_s1, %s4241_s1 }
  0x24   :  { %p4248_p8 = por %p4247_p7, %p4246_p6 }
  0x26   :  { %64 = dma.hbm_to_vmem [thread:$0]  %s5455_s29, 512, %s59_s4, [#allocation6], %s4553_s5, %s4553_s5, %s4554_s28  }
  0x27   :  { %p4249_p9 = pnand %p4248_p8, %p4242_p5 }
  0x29   :  { %4252 = shalt.err (!%p4249_p9)
}
  0x2a   :  { %s5456_s2 = sld [smem:[#allocation41_spill]]  ;;  %s4555_s3 = smov [#allocation11]  }
  0x2b   :  { %s118_s7 = sshll.u32 %s4555_s3, 4  ;;  %s4556_s8 = smov [#allocation14]   ;;  %s119_s7 = int_to_ptr.vmem [resolvable:$true] %s118_s7 }
  0x2c   :  { %s141_s9 = sshll.u32 %s4556_s8, 4  ;;  %s4261_s4 = scalar_lea.vmem %s119_s7, 512  ;;  %s142_s9 = int_to_ptr.vmem [resolvable:$true] %s141_s9 }
  0x2d   :  { %p4262_p10 = scmp.ne.s32.totalorder %s119_s7, %s4261_s4  ;;  %p4266_p11 = scmp.lt.s32.totalorder %s119_s7, %s119_s7 }
  0x2e   :  { %p4267_p12 = scmp.lt.s32.totalorder %s4261_s4, %s4261_s4 }
  0x30   :  { %92 = dma.hbm_to_vmem [thread:$0]  %s5456_s2, 512, %s87_s30, [#allocation9], %s4553_s5, %s4553_s5, %s4554_s28  }
  0x31   :  { %p4268_p13 = por %p4267_p12, %p4266_p11 }
  0x33   :  { %p4269_p0 = pnand %p4268_p13, %p4262_p10 }
  0x35   :  { %4272 = shalt.err (!%p4269_p0)
}
  0x36   :  { %s5457_s29 = sld [smem:[#allocation47_spill]]  ;;  %s4281_s30 = scalar_lea.vmem %s142_s9, 16 }
  0x37   :  { %p4282_p1 = scmp.ne.s32.totalorder %s142_s9, %s4281_s30  ;;  %s4285_s1 = scalar_lea.vmem %s142_s9, 32 }
  0x38   :  { %p4286_p2 = scmp.lt.s32.totalorder %s142_s9, %s142_s9  ;;  %p4287_p3 = scmp.lt.s32.totalorder %s4285_s1, %s4281_s30 }
  0x3a   :  { %p4288_p4 = por %p4287_p3, %p4286_p2 }
  0x3c   :  { %124 = dma.hbm_to_vmem [thread:$0]  %s5457_s29, 512, %s119_s7, [#allocation12], %s4553_s5, %s4553_s5, %s4554_s28  }
  0x3d   :  { %p4289_p5 = pnand %p4288_p4, %p4282_p1 }
  0x3f   :  { %4292 = shalt.err (!%p4289_p5)
}
  0x40   :  { %144 = dma.hbm_to_vmem [thread:$0]  %s5428_s13, 16, %s142_s9, [#allocation15]  }
  0x41   :  { %s4557_s2 = smov [#allocation17]   ;;  %s4558_s8 = smov [#allocation20]  }
  0x42   :  { %s160_s3 = sshll.u32 %s4557_s2, 4  ;;  %s185_s4 = sshll.u32 %s4558_s8, 4  ;;  %s161_s3 = int_to_ptr.vmem [resolvable:$true] %s160_s3  ;;  %s186_s4 = int_to_ptr.vmem [resolvable:$true] %s185_s4 }
  0x43   :  { %s4301_s0 = scalar_lea.vmem %s161_s3, 512  ;;  %p4306_p7 = scmp.lt.s32.totalorder %s161_s3, %s161_s3 }
  0x44   :  { %p4302_p6 = scmp.ne.s32.totalorder %s161_s3, %s4301_s0  ;;  %p4307_p8 = scmp.lt.s32.totalorder %s4301_s0, %s4301_s0 }
  0x46   :  { %p4308_p9 = por %p4307_p8, %p4306_p7 }
  0x48   :  { %p4309_p10 = pnand %p4308_p9, %p4302_p6 }
  0x4a   :  { %4312 = shalt.err (!%p4309_p10)
}
  0x4b   :  { %166 = dma.hbm_to_vmem [thread:$0]  %s5430_s15, 512, %s161_s3, [#allocation18], %s4553_s5, %s4553_s5, %s4554_s28  }
  0x4c   :  { %s4321_s13 = scalar_lea.vmem %s186_s4, 16  ;;  %s4325_s9 = scalar_lea.vmem %s186_s4, 32 }
  0x4d   :  { %p4322_p11 = scmp.ne.s32.totalorder %s186_s4, %s4321_s13  ;;  %p4326_p12 = scmp.lt.s32.totalorder %s186_s4, %s186_s4 }
  0x4e   :  { %p4327_p13 = scmp.lt.s32.totalorder %s4325_s9, %s4321_s13 }
  0x50   :  { %p4328_p0 = por %p4327_p13, %p4326_p12 }
  0x52   :  { %p4329_p1 = pnand %p4328_p0, %p4322_p11 }
  0x54   :  { %4332 = shalt.err (!%p4329_p1)
}
  0x55   :  { %188 = dma.hbm_to_vmem [thread:$0]  %s5433_s18, 16, %s186_s4, [#allocation21]  }
  0x56   :  { %s4559_s1 = smov [#allocation23]   ;;  %s4560_s11 = smov [#allocation2]  }
  0x57   :  { %s207_s6 = sshll.u32 %s4559_s1, 4  ;;  %s46_s2 = sshll.u32 %s4560_s11, 4  ;;  %s208_s6 = int_to_ptr.vmem [resolvable:$true] %s207_s6  ;;  %s47_s2 = int_to_ptr.vmem [resolvable:$true] %s46_s2 }
  0x58   :  { %s4341_s8 = scalar_lea.vmem %s208_s6, 16  ;;  %s4345_s15 = scalar_lea.vmem %s208_s6, 32 }
  0x59   :  { %p4342_p2 = scmp.ne.s32.totalorder %s208_s6, %s4341_s8  ;;  %p4346_p3 = scmp.lt.s32.totalorder %s208_s6, %s208_s6 }
  0x5a   :  { %p4347_p4 = scmp.lt.s32.totalorder %s4345_s15, %s4341_s8 }
  0x5c   :  { %p4348_p5 = por %p4347_p4, %p4346_p3 }
  0x5e   :  { %p4349_p6 = pnand %p4348_p5, %p4342_p2 }
  0x60   :  { %4352 = shalt.err (!%p4349_p6)
}
  0x61   :  { %210 = dma.hbm_to_vmem [thread:$0]  %s5435_s20, 16, %s208_s6, [#allocation24]  }
  0x62   :  { %s4361_s7 = scalar_lea.vmem %s47_s2, 256  ;;  %p4366_p8 = scmp.lt.s32.totalorder %s47_s2, %s47_s2 }
  0x63   :  { %p4362_p7 = scmp.ne.s32.totalorder %s47_s2, %s4361_s7  ;;  %p4367_p9 = scmp.lt.s32.totalorder %s4361_s7, %s4361_s7 }
  0x65   :  { %p4368_p10 = por %p4367_p9, %p4366_p8 }
  0x67   :  { %p4369_p11 = pnand %p4368_p10, %p4362_p7 }
  0x69   :  { %4372 = shalt.err (!%p4369_p11)
}
  0x6a   :  { %s5458_s10 = sld [smem:[#allocation36_spill]]  ;;  %s4561_s13 = smov [#allocation7]  }
  0x6b   :  { %s72_s9 = sshll.u32 %s4561_s13, 4  ;;  %s4562_s29 = smov [#allocation10]   ;;  %s73_s9 = int_to_ptr.vmem [resolvable:$true] %s72_s9 }
  0x6c   :  { %s104_s30 = sshll.u32 %s4562_s29, 4  ;;  %s4381_s20 = scalar_lea.vmem %s73_s9, 512  ;;  %s105_s30 = int_to_ptr.vmem [resolvable:$true] %s104_s30 }
  0x6d   :  { %p4382_p12 = scmp.ne.s32.totalorder %s73_s9, %s4381_s20  ;;  %p4386_p13 = scmp.lt.s32.totalorder %s73_s9, %s73_s9 }
  0x6e   :  { %p4387_p0 = scmp.lt.s32.totalorder %s4381_s20, %s4381_s20 }
  0x70   :  { %52 = dma.hbm_to_vmem [thread:$0]  %s5458_s10, 256, %s47_s2, [#allocation3], %s4553_s5, %s4553_s5, %s4554_s28  }
  0x71   :  { %p4388_p1 = por %p4387_p0, %p4386_p13 }
  0x73   :  { %p4389_p2 = pnand %p4388_p1, %p4382_p12 }
  0x75   :  { %4392 = shalt.err (!%p4389_p2)
}
  0x76   :  { %s5459_s11 = sld [smem:[#allocation39_spill]]  ;;  %s4401_s2 = scalar_lea.vmem %s105_s30, 512 }
  0x77   :  { %p4402_p3 = scmp.ne.s32.totalorder %s105_s30, %s4401_s2  ;;  %p4406_p4 = scmp.lt.s32.totalorder %s105_s30, %s105_s30 }
  0x78   :  { %p4407_p5 = scmp.lt.s32.totalorder %s4401_s2, %s4401_s2 }
  0x7a   :  { %p4408_p6 = por %p4407_p5, %p4406_p4 }
  0x7c   :  { %78 = dma.hbm_to_vmem [thread:$0]  %s5459_s11, 512, %s73_s9, [#allocation6], %s4553_s5, %s4553_s5, %s4554_s28  }
  0x7d   :  { %p4409_p7 = pnand %p4408_p6, %p4402_p3 }
  0x7f   :  { %4412 = shalt.err (!%p4409_p7)
}
  0x80   :  { %s5460_s3 = sld [smem:[#allocation45_spill]]  ;;  %s4563_s0 = smov [#allocation13]  }
  0x81   :  { %s131_s7 = sshll.u32 %s4563_s0, 4  ;;  %s4564_s18 = smov [#allocation16]   ;;  %s132_s7 = int_to_ptr.vmem [resolvable:$true] %s131_s7 }
  0x82   :  { %s151_s4 = sshll.u32 %s4564_s18, 4  ;;  %s4421_s10 = scalar_lea.vmem %s132_s7, 16  ;;  %s152_s4 = int_to_ptr.vmem [resolvable:$true] %s151_s4 }
  0x83   :  { %p4422_p8 = scmp.ne.s32.totalorder %s132_s7, %s4421_s10  ;;  %s4425_s13 = scalar_lea.vmem %s132_s7, 32 }
  0x84   :  { %p4426_p9 = scmp.lt.s32.totalorder %s132_s7, %s132_s7  ;;  %p4427_p10 = scmp.lt.s32.totalorder %s4425_s13, %s4421_s10 }
  0x86   :  { %110 = dma.hbm_to_vmem [thread:$0]  %s5460_s3, 512, %s105_s30, [#allocation9], %s4553_s5, %s4553_s5, %s4554_s28  }
  0x87   :  { %p4428_p11 = por %p4427_p10, %p4426_p9 }
  0x89   :  { %p4429_p12 = pnand %p4428_p11, %p4422_p8 }
  0x8b   :  { %4432 = shalt.err (!%p4429_p12)
}
  0x8c   :  { %134 = dma.hbm_to_vmem [thread:$0]  %s5427_s12, 16, %s132_s7, [#allocation12]  }
  0x8d   :  { %s4441_s20 = scalar_lea.vmem %s152_s4, 16  ;;  %s4445_s30 = scalar_lea.vmem %s152_s4, 32 }
  0x8e   :  { %p4442_p13 = scmp.ne.s32.totalorder %s152_s4, %s4441_s20  ;;  %p4446_p0 = scmp.lt.s32.totalorder %s152_s4, %s152_s4 }
  0x8f   :  { %p4447_p1 = scmp.lt.s32.totalorder %s4445_s30, %s4441_s20 }
  0x91   :  { %p4448_p2 = por %p4447_p1, %p4446_p0 }
  0x93   :  { %p4449_p3 = pnand %p4448_p2, %p4442_p13 }
  0x95   :  { %4452 = shalt.err (!%p4449_p3)
}
  0x96   :  { %154 = dma.hbm_to_vmem [thread:$0]  %s5429_s14, 16, %s152_s4, [#allocation15]  }
  0x97   :  { %s4565_s11 = smov [#allocation19]   ;;  %s4566_s8 = smov [#allocation22]  }
  0x98   :  { %s175_s2 = sshll.u32 %s4565_s11, 4  ;;  %s194_s15 = sshll.u32 %s4566_s8, 4  ;;  %s176_s2 = int_to_ptr.vmem [resolvable:$true] %s175_s2  ;;  %s195_s15 = int_to_ptr.vmem [resolvable:$true] %s194_s15 }
  0x99   :  { %s4461_s3 = scalar_lea.vmem %s176_s2, 16  ;;  %s4465_s12 = scalar_lea.vmem %s176_s2, 32 }
  0x9a   :  { %p4462_p4 = scmp.ne.s32.totalorder %s176_s2, %s4461_s3  ;;  %p4466_p5 = scmp.lt.s32.totalorder %s176_s2, %s176_s2 }
  0x9b   :  { %p4467_p6 = scmp.lt.s32.totalorder %s4465_s12, %s4461_s3 }
  0x9d   :  { %p4468_p7 = por %p4467_p6, %p4466_p5 }
  0x9f   :  { %p4469_p8 = pnand %p4468_p7, %p4462_p4 }
  0xa1   :  { %4472 = shalt.err (!%p4469_p8)
}
  0xa2   :  { %178 = dma.hbm_to_vmem [thread:$0]  %s5432_s17, 16, %s176_s2, [#allocation18]  }
  0xa3   :  { %s4481_s18 = scalar_lea.vmem %s195_s15, 1024  ;;  %p4486_p10 = scmp.lt.s32.totalorder %s195_s15, %s195_s15 }
  0xa4   :  { %p4482_p9 = scmp.ne.s32.totalorder %s195_s15, %s4481_s18  ;;  %p4487_p11 = scmp.lt.s32.totalorder %s4481_s18, %s4481_s18 }
  0xa6   :  { %p4488_p12 = por %p4487_p11, %p4486_p10 }
  0xa8   :  { %p4489_p13 = pnand %p4488_p12, %p4482_p9 }
  0xaa   :  { %4492 = shalt.err (!%p4489_p13)
}
  0xab   :  { %200 = dma.hbm_to_vmem [thread:$0]  %s5434_s19, 1024, %s195_s15, [#allocation21], %s4553_s5, %s4553_s5, %s4554_s28  }
  0xac   :  { %s4567_s10 = smov [#allocation25]  }
  0xad   :  { %s220_s13 = sshll.u32 %s4567_s10, 4  ;;  %s221_s13 = int_to_ptr.vmem [resolvable:$true] %s220_s13 }
  0xae   :  { %s4501_s9 = scalar_lea.vmem %s221_s13, 2048  ;;  %p4506_p1 = scmp.lt.s32.totalorder %s221_s13, %s221_s13 }
  0xaf   :  { %p4502_p0 = scmp.ne.s32.totalorder %s221_s13, %s4501_s9  ;;  %p4507_p2 = scmp.lt.s32.totalorder %s4501_s9, %s4501_s9 }
  0xb1   :  { %p4508_p3 = por %p4507_p2, %p4506_p1 }
  0xb3   :  { %p4509_p4 = pnand %p4508_p3, %p4502_p0 }
  0xb5   :  { %4512 = shalt.err (!%p4509_p4)
}
  0xb6   :  { %226 = dma.hbm_to_vmem [thread:$0]  %s5438_s23, 2048, %s221_s13, [#allocation24], %s4553_s5, %s4553_s5, %s4554_s28  }
  0xb7   :  { %4533 = dma.done.wait [#allocation3], 256  }
  0xb8   :  { %4534 = vsyncadd [#allocation3], 4294967040 }
  0xb9   :  { %4535 = dma.done.wait [#allocation6], 1024  }
  0xba   :  { %4536 = vsyncadd [#allocation6], 4294966272 }
  0xbb   :  { %4537 = dma.done.wait [#allocation9], 1024  }
  0xbc   :  { %4538 = vsyncadd [#allocation9], 4294966272 }
  0xbd   :  { %4539 = dma.done.wait [#allocation12], 528  }
  0xbe   :  { %4540 = vsyncadd [#allocation12], 4294966768 }
  0xbf   :  { %4541 = dma.done.wait [#allocation15], 32  }
  0xc0   :  { %4542 = vsyncadd [#allocation15], 4294967264 }
  0xc1   :  { %4543 = dma.done.wait [#allocation18], 528  }
  0xc2   :  { %4544 = vsyncadd [#allocation18], 4294966768 }
  0xc3   :  { %4545 = dma.done.wait [#allocation21], 1040  }
  0xc4   :  { %4546 = vsyncadd [#allocation21], 4294966256 }
  0xc5   :  { %4547 = dma.done.wait [#allocation24], 2064  }
  0xc6   :  { %4548 = vsyncadd [#allocation24], 4294965232  ;;  %vm291_vm0 = vcmask 261120   ;;  %v283_v0 = vld [vmem:[#allocation5 + $0x18] sm:$0xff]  ;;  %v282_v1 = vld [vmem:[#allocation5 + $0x10] sm:$0xff]  ;;  %vm403_vm1 = vcmask 1045504   ;;  %v373_v21 = vlaneseq }
  0xc7   :  { %3696 = vmatprep.subr.mxu0 %v283_v0  ;;  %v278_v2 = vld [vmem:[#allocation2] sm:$0xff]  ;;  %v281_v3 = vld [vmem:[#allocation5 + $0x8] sm:$0xff]  ;;  %v280_v4 = vld [vmem:[#allocation5] sm:$0xff]  ;;  %v4568_v10 = vmov 0.0   ;;  %s5461_s5 = sld [smem:[#allocation38_spill]]  ;;  %vm396_vm2 = vcmask 244736  }
  0xc8   :  { %3697 = vmatpush3.msra.mxu0 %v283_v0  ;;  %3704 = vmatprep.mubr.msk.f32.mxu0 %vm291_vm0, %v278_v2  ;;  %v279_v5 = vld [vmem:[#allocation2 + $0x8] sm:$0xff]  ;;  %v387_v7 = vld [vmem:[#allocation7 + $0x10] sm:$0xff]  ;;  %v386_v8 = vld [vmem:[#allocation7 + $0x8] sm:$0xff]  ;;  %vm4569_vm3 = vmmov 0   ;;  %s5462_s30 = sld [smem:[#allocation40_spill]]  ;;  %s4570_s1 = smov 98  }
  0xc9   :  { %3698 = vmatprep.subr.mxu0 %v282_v1  ;;  %v388_v6 = vld [vmem:[#allocation7 + $0x18] sm:$0x3f]  ;;  %v385_v9 = vld [vmem:[#allocation7] sm:$0xff]  ;;  %3723 = vmatprep.subr.mxu1 %v4568_v10  ;;  %v374_v22 = vand.u32 127, %v373_v21  ;;  %vm642_vm8 = vcmask 64512   ;;  %s4571_s6 = smov 60  }
  0xca   :  { %3699 = vmatpush3.msra.mxu0 %v282_v1  ;;  %3725 = vmatprep.mubr.msk.f32.mxu1 %vm4569_vm3, %v4568_v10  ;;  %s4572_s11 = smov 68   ;;  %s5463_s15 = sld [smem:[#allocation42_spill]]  ;;  %vm2396_vm9 = vcmask 1041409   ;;  %vm2309_vm10 = vcmask 523264   ;;  %vm3406_vm11 = vcmask 254976  }
  0xcb   :  { %3700 = vmatprep.subr.mxu0 %v281_v3  ;;  %vm376_vm4 = vcmp.lt.s32.totalorder %v374_v22, 15  ;;  %vm380_vm5 = vcmp.ge.s32.totalorder %v374_v22, 15  ;;  %vm381_vm6 = vcmp.lt.s32.totalorder %v374_v22, 30  ;;  %s5464_s0 = sld [smem:[#allocation43_spill]] }
  0xcc   :  { %3701 = vmatpush3.msra.mxu0 %v281_v3  ;;  %v4820_v25 = vsel %vm376_vm4, 1.0, %v4568_v10  ;;  %vm382_vm7 = vmand %vm380_vm5, %vm381_vm6  ;;  %s5465_s14 = sld [smem:[#allocation44_spill]] }
  0xcd   :  { %3702 = vmatprep.subr.mxu0 %v280_v4  ;;  %v3430_v12 = vld [vmem:[%s5461_s5] ss:$0 sm:$0xff]  ;;  %v4828_v29 = vsel %vm382_vm7, 1.0, %v4568_v10  ;;  %s5466_s13 = sld [smem:[#allocation46_spill]] }
  0xce   :  { %3703 = vmatpush3.msra.mxu0 %v280_v4  ;;  %v3435_v17 = vld [vmem:[%s5462_s30] ss:$0 sm:$0xff]  ;;  %s4573_s30 = smov [#allocation26]  }
  0xcf   :  { %3705 = vmatmul.mubr.msk.f32.vlgmr.msra.gmra.mxu0 %vm291_vm0, %v279_v5  ;;  %3707 = vmatprep.subr.msk.mxu0 %vm403_vm1, %v388_v6 }
  0xd0   :  { %3708 = vmatpush3.msk.msra.mxu0 %vm403_vm1, %v388_v6 }
  0xd1   :  { %3709 = vmatprep.subr.mxu0 %v387_v7 }
  0xd2   :  { %3710 = vmatpush3.msra.mxu0 %v387_v7 }
  0xd3   :  { %3711 = vmatprep.subr.mxu0 %v386_v8 }
  0xd4   :  { %3712 = vmatpush3.msra.mxu0 %v386_v8 }
  0xd5   :  { %3713 = vmatprep.subr.mxu0 %v385_v9 }
  0xd6   :  { %3714 = vmatpush3.msra.mxu0 %v385_v9 }
  0xd7   :  { %3718 = vmatprep.subr.mxu0 %v4568_v10 }
 0x18f   :  { %v3706_v11 = vpop.f32.mrf.mxu0 }
 0x190   :  { %v4797_v15 = vadd.f32 %v3706_v11, %v3430_v12 }
 0x191   :  { %v364_v13 = vpop.f32.mrf.mxu0 }
 0x192   :  { %v4795_v14 = vadd.f32 %v3430_v12, %v364_v13 }
 0x194   :  { %3715 = vmatprep.mubr.msk.f32.mxu0 %vm396_vm2, %v4795_v14 }
 0x195   :  { %3716 = vmatmul.mubr.msk.f32.vlgmr.msra.gmra.mxu0 %vm396_vm2, %v4797_v15 }
 0x196   :  { %3720 = vmatprep.mubr.msk.f32.mxu0 %vm4569_vm3, %v4568_v10 }
 0x255   :  { %v3717_v16 = vpop.f32.mrf.mxu0 }
 0x256   :  { %v4814_v20 = vadd.f32 %v3717_v16, %v3435_v17 }
 0x257   :  { %v473_v18 = vpop.f32.mrf.mxu0 }
 0x258   :  { %v4810_v19 = vadd.f32 %v3435_v17, %v473_v18  ;;  %v483_v26 = vmul.f32 0.2581989, %v4814_v20 }
 0x25a   :  { %487 = vrot.lane.b32.xlu0 %v4810_v19, %s4570_s1  ;;  %v482_v23 = vmul.f32 0.2581989, %v4810_v19  ;;  %v485_v31 = vmul.f32 %v4820_v25, %v483_v26  ;;  %v672_v32 = vmul.f32 %v4828_v29, %v483_v26 }
 0x25c   :  { %v484_v27 = vmul.f32 %v4820_v25, %v482_v23  ;;  %v671_v30 = vmul.f32 %v4828_v29, %v482_v23 }
 0x25e   :  { %565 = vrot.lane.b32.xlu0 %v4814_v20, %s4570_s1 }
 0x2cc   :  { %v488_v24 = vpop.permute.xlu0 %487 }
 0x2cd   :  { %3719 = vmatpush3.xpose.msk.msra.mxu0 %vm396_vm2, %v488_v24 }
 0x2ce   :  { %3728 = vmatprep.subr.mxu0 %v4568_v10 }
 0x2d0   :  { %v566_v28 = vpop.permute.xlu0 %565  ;;  %3721 = vmatmul.mubr.msk.f32.vlgmr.msra.gmra.mxu0 %vm396_vm2, %v484_v27  ;;  %v1158_v27 = vld [vmem:[#allocation8 + $0x18] sm:$0x3f] }
 0x2d1   :  { %3724 = vmatpush3.xpose.msk.msra.mxu1 %vm396_vm2, %v566_v28  ;;  %3729 = vmatpush3.xpose.msk.msra.mxu0 %vm396_vm2, %v488_v24 }
 0x2d2   :  { %3730 = vmatprep.mubr.msk.f32.mxu0 %vm4569_vm3, %v4568_v10  ;;  %3733 = vmatprep.subr.mxu1 %v4568_v10 }
 0x2d3   :  { %3738 = vmatprep.subr.mxu0 %v4568_v10 }
 0x2d4   :  { %3726 = vmatmul.mubr.msk.f32.vlgmr.msra.gmra.mxu1 %vm396_vm2, %v485_v31  ;;  %3731 = vmatmul.mubr.msk.f32.vlgmr.msra.gmra.mxu0 %vm396_vm2, %v671_v30  ;;  %v1156_v30 = vld [vmem:[#allocation8 + $0x8] sm:$0xff]  ;;  %v1155_v31 = vld [vmem:[#allocation8] sm:$0xff] }
 0x2d5   :  { %3734 = vmatpush3.xpose.msk.msra.mxu1 %vm396_vm2, %v566_v28  ;;  %3735 = vmatprep.mubr.msk.f32.mxu1 %vm4569_vm3, %v4568_v10  ;;  %v1157_v28 = vld [vmem:[#allocation8 + $0x10] sm:$0xff] }
 0x2d6   :  { %3743 = vmatprep.subr.mxu1 %v4568_v10  ;;  %3740 = vmatprep.mubr.msk.f32.mxu0 %vm4569_vm3, %v4568_v10 }
 0x2d8   :  { %3736 = vmatmul.mubr.msk.f32.vlgmr.msra.gmra.mxu1 %vm396_vm2, %v672_v32 }
 0x2d9   :  { %3745 = vmatprep.mubr.msk.f32.mxu1 %vm4569_vm3, %v4568_v10 }
 0x390   :  { %v560_v33 = vpop.f32.mrf.mxu0 }
 0x391   :  { %v643_v34 = vsel %vm642_vm8, %v560_v33, -inf }
 0x392   :  { %644 = vmax.xlane.f32.xlu0 %v643_v34  ;;  %v3722_v35 = vpop.f32.mrf.mxu0 }
 0x394   :  { %v638_v36 = vpop.f32.mrf.mxu1  ;;  %v742_v37 = vpop.f32.mrf.mxu0 }
 0x395   :  { %v819_v38 = vsel %vm642_vm8, %v742_v37, -inf  ;;  %v646_v44 = vsel %vm642_vm8, %v638_v36, -inf }
 0x396   :  { %v3727_v39 = vpop.f32.mrf.mxu1  ;;  %820 = vmax.xlane.f32.xlu1 %v819_v38  ;;  %v3732_v40 = vpop.f32.mrf.mxu0 }
 0x398   :  { %v815_v41 = vpop.f32.mrf.mxu1 }
 0x399   :  { %v822_v42 = vsel %vm642_vm8, %v815_v41, -inf }
 0x39a   :  { %v3737_v43 = vpop.f32.mrf.mxu1  ;;  %823 = vmax.xlane.f32.xlu1 %v822_v42  ;;  %v3451_v42 = vld [vmem:[%s5463_s15] ss:$0 sm:$0xff] }
 0x39e   :  { %647 = vmax.xlane.f32.xlu1 %v646_v44 }
 0x3af   :  { %842 = vrot.lane.b32.xlu1 %v4828_v29, %s4571_s6 }
 0x3b3   :  { %666 = vrot.lane.b32.xlu1 %v4820_v25, %s4571_s6 }
 0x41b   :  { %v645_v55 = vpop.xlane.xlu0 %644 }
 0x41c   :  { %v649_v56 = vsub.f32 %v560_v33, %v645_v55 }
 0x41e   :  { %v651_v58 = vmul.f32 1.442695, %v649_v56 }
 0x41f   :  { %v821_v45 = vpop.xlane.xlu1 %820 }
 0x420   :  { %v825_v46 = vsub.f32 %v742_v37, %v821_v45 }
 0x422   :  { %v827_v47 = vmul.f32 1.442695, %v825_v46 }
 0x423   :  { %v824_v48 = vpop.xlane.xlu1 %823 }
 0x424   :  { %4141 = vpow2.f32 %v827_v47  ;;  %v826_v59 = vsub.f32 %v815_v41, %v824_v48 }
 0x426   :  { %v829_v60 = vmul.f32 1.442695, %v826_v59 }
 0x427   :  { %v648_v49 = vpop.xlane.xlu1 %647 }
 0x428   :  { %v650_v54 = vsub.f32 %v638_v36, %v648_v49 }
 0x42a   :  { %v653_v57 = vmul.f32 1.442695, %v650_v54 }
 0x42b   :  { %v4856_v50 = vpop.permute.xlu1 %842 }
 0x42c   :  { %v845_v51 = vmul.f32 %v4856_v50, %v4810_v19  ;;  %4143 = vpow2.f32 %v653_v57  ;;  %v846_v61 = vmul.f32 %v4856_v50, %v4814_v20 }
 0x42d   :  { %4145 = vpow2.f32 %v651_v58 }
 0x42e   :  { %848 = vrot.lane.b32.xlu0 %v845_v51, %s4572_s11  ;;  %4147 = vpow2.f32 %v829_v60 }
 0x42f   :  { %v4868_v4 = vpop.permute.xlu1 %666 }
 0x430   :  { %v669_v5 = vmul.f32 %v4868_v4, %v4810_v19  ;;  %v670_v6 = vmul.f32 %v4868_v4, %v4814_v20 }
 0x431   :  { %v4142_v52 = vpop.eup %4141 }
 0x432   :  { %v831_v53 = vsel %vm642_vm8, %v4142_v52, 0.0 }
 0x433   :  { %832 = vadd.xlane.f32.xlu1 %v831_v53 }
 0x439   :  { %v4144_v62 = vpop.eup %4143 }
 0x43a   :  { %v658_v63 = vsel %vm642_vm8, %v4144_v62, 0.0  ;;  %v4146_v0 = vpop.eup %4145 }
 0x43b   :  { %v655_v1 = vsel %vm642_vm8, %v4146_v0, 0.0  ;;  %v4148_v2 = vpop.eup %4147 }
 0x43c   :  { %v834_v3 = vsel %vm642_vm8, %v4148_v2, 0.0 }
 0x444   :  { %925 = vrot.lane.b32.xlu1 %v846_v61, %s4572_s11  ;;  %v1300_v61 = vld [vmem:[#allocation10 + $0x18] sm:$0x3f] }
 0x44d   :  { %659 = vadd.xlane.f32.xlu0 %v658_v63  ;;  %v1297_v63 = vld [vmem:[#allocation10] sm:$0xff] }
 0x451   :  { %656 = vadd.xlane.f32.xlu0 %v655_v1 }
 0x455   :  { %835 = vadd.xlane.f32.xlu0 %v834_v3 }
 0x46b   :  { %1002 = vrot.lane.b32.xlu0 %v669_v5, %s4572_s11 }
 0x46f   :  { %1079 = vrot.lane.b32.xlu0 %v670_v6, %s4572_s11 }
 0x4a0   :  { %v849_v7 = vpop.permute.xlu0 %848 }
 0x4a1   :  { %3739 = vmatpush3.msra.mxu0 %v849_v7 }
 0x4a2   :  { %3748 = vmatprep.subr.mxu0 %v4568_v10 }
 0x4bc   :  { %v833_v8 = vpop.xlane.xlu1 %832 }
 0x4bd   :  { %4149 = vrcp.f32 %v833_v8  ;;  %v3455_v8 = vld [vmem:[%s5464_s0] ss:$0 sm:$0xff] }
 0x4c0   :  { %v926_v9 = vpop.permute.xlu1 %925 }
 0x4c1   :  { %3744 = vmatpush3.msra.mxu1 %v926_v9 }
 0x4c2   :  { %3753 = vmatprep.subr.mxu1 %v4568_v10 }
 0x4ca   :  { %v4150_v11 = vpop.eup %4149 }
 0x4cb   :  { %v839_v12 = vmul.f32 %v4150_v11, %v4142_v52  ;;  %v3456_v11 = vld [vmem:[%s5465_s14] ss:$0 sm:$0xff] }
 0x4cd   :  { %3741 = vmatmul.mubr.msk.f32.vlgmr.msra.gmra.mxu0 %vm642_vm8, %v839_v12 }
 0x4ce   :  { %3750 = vmatprep.mubr.msk.f32.mxu0 %vm4569_vm3, %v4568_v10 }
 0x4d6   :  { %v660_v13 = vpop.xlane.xlu0 %659 }
 0x4da   :  { %v657_v16 = vpop.xlane.xlu0 %656 }
 0x4db   :  { %4151 = vrcp.f32 %v657_v16 }
 0x4de   :  { %v836_v17 = vpop.xlane.xlu0 %835 }
 0x4df   :  { %4153 = vrcp.f32 %v836_v17 }
 0x4e0   :  { %4155 = vrcp.f32 %v660_v13 }
 0x4e2   :  { %v1003_v18 = vpop.permute.xlu0 %1002 }
 0x4e3   :  { %3749 = vmatpush3.msra.mxu0 %v1003_v18 }
 0x4e4   :  { %3758 = vmatprep.subr.msk.mxu0 %vm403_vm1, %v1158_v27 }
 0x4e6   :  { %v1080_v24 = vpop.permute.xlu0 %1079 }
 0x4e8   :  { %v4152_v19 = vpop.eup %4151 }
 0x4e9   :  { %v663_v20 = vmul.f32 %v4152_v19, %v4146_v0 }
 0x4eb   :  { %3751 = vmatmul.mubr.msk.f32.vlgmr.msra.gmra.mxu0 %vm642_vm8, %v663_v20  ;;  %v3457_v20 = vld [vmem:[%s5466_s13] ss:$0 sm:$0xff] }
 0x4ec   :  { %v4154_v21 = vpop.eup %4153  ;;  %3759 = vmatpush3.msk.msra.mxu0 %vm403_vm1, %v1158_v27 }
 0x4ed   :  { %v840_v22 = vmul.f32 %v4154_v21, %v4148_v2  ;;  %v4156_v23 = vpop.eup %4155  ;;  %3760 = vmatprep.subr.mxu0 %v1157_v28 }
 0x4ee   :  { %v664_v26 = vmul.f32 %v4156_v23, %v4144_v62  ;;  %3761 = vmatpush3.msra.mxu0 %v1157_v28  ;;  %v1298_v62 = vld [vmem:[#allocation10 + $0x8] sm:$0xff] }
 0x4ef   :  { %3746 = vmatmul.mubr.msk.f32.vlgmr.msra.gmra.mxu1 %vm642_vm8, %v840_v22  ;;  %3762 = vmatprep.subr.mxu0 %v1156_v30 }
 0x4f0   :  { %3754 = vmatpush3.msra.mxu1 %v1080_v24  ;;  %3755 = vmatprep.mubr.msk.f32.mxu1 %vm4569_vm3, %v4568_v10 }
 0x4f1   :  { %3763 = vmatpush3.msra.mxu0 %v1156_v30  ;;  %3769 = vmatprep.subr.msk.mxu1 %vm403_vm1, %v1300_v61 }
 0x4f2   :  { %3764 = vmatprep.subr.mxu0 %v1155_v31 }
 0x4f3   :  { %3756 = vmatmul.mubr.msk.f32.vlgmr.msra.gmra.mxu1 %vm642_vm8, %v664_v26  ;;  %3765 = vmatpush3.msra.mxu0 %v1155_v31 }
 0x4f4   :  { %3780 = vmatprep.subr.mxu0 %v4568_v10  ;;  %3770 = vmatpush3.msk.msra.mxu1 %vm403_vm1, %v1300_v61 }
 0x58d   :  { %v920_v32 = vpop.f32.mrf.mxu0 }
 0x58f   :  { %v3742_v33 = vpop.f32.mrf.mxu0 }
 0x5ab   :  { %v1074_v34 = vpop.f32.mrf.mxu0 }
 0x5ac   :  { %v1075_v35 = vadd.f32 %v1074_v34, %v920_v32 }
 0x5ad   :  { %v3752_v36 = vpop.f32.mrf.mxu0 }
 0x5ae   :  { %3766 = vmatprep.mubr.msk.f32.mxu0 %vm396_vm2, %v1075_v35 }
 0x5af   :  { %v997_v37 = vpop.f32.mrf.mxu1 }
 0x5b1   :  { %v3747_v38 = vpop.f32.mrf.mxu1 }
 0x5b3   :  { %v1151_v39 = vpop.f32.mrf.mxu1 }
 0x5b4   :  { %v1152_v40 = vadd.f32 %v1151_v39, %v997_v37 }
 0x5b5   :  { %v3757_v41 = vpop.f32.mrf.mxu1 }
 0x5b6   :  { %3767 = vmatmul.mubr.msk.f32.vlgmr.msra.gmra.mxu0 %vm396_vm2, %v1152_v40 }
 0x5b7   :  { %3782 = vmatprep.mubr.msk.f32.mxu0 %vm4569_vm3, %v4568_v10 }
 0x676   :  { %v3768_v43 = vpop.f32.mrf.mxu0 }
 0x677   :  { %v1247_v44 = vadd.f32 %v3768_v43, %v3451_v42 }
 0x678   :  { %v1241_v45 = vpop.f32.mrf.mxu0 }
 0x679   :  { %v1242_v46 = vadd.f32 %v3451_v42, %v1241_v45  ;;  %v1251_v47 = vadd.f32 %v1247_v44, %v4797_v15 }
 0x67b   :  { %v1255_v48 = vsel %vm396_vm2, %v1251_v47, 0.0  ;;  %v1250_v49 = vadd.f32 %v1242_v46, %v4795_v14  ;;  %v1299_v14 = vld [vmem:[#allocation10 + $0x10] sm:$0xff] }
 0x67c   :  { %1256 = vadd.xlane.f32.xlu1 %v1255_v48  ;;  %3771 = vmatprep.subr.mxu1 %v1299_v14 }
 0x67d   :  { %v1252_v51 = vsel %vm396_vm2, %v1250_v49, 0.0  ;;  %3772 = vmatpush3.msra.mxu1 %v1299_v14 }
 0x67e   :  { %1253 = vadd.xlane.f32.xlu0 %v1252_v51  ;;  %3773 = vmatprep.subr.mxu1 %v1298_v62 }
 0x67f   :  { %3774 = vmatpush3.msra.mxu1 %v1298_v62 }
 0x680   :  { %3775 = vmatprep.subr.mxu1 %v1297_v63 }
 0x681   :  { %3776 = vmatpush3.msra.mxu1 %v1297_v63 }
 0x682   :  { %3785 = vmatprep.subr.mxu1 %v4568_v10 }
 0x705   :  { %v1257_v52 = vpop.xlane.xlu1 %1256 }
 0x706   :  { %v1260_v53 = vmul.f32 0.033333335, %v1257_v52 }
 0x707   :  { %v1254_v54 = vpop.xlane.xlu0 %1253 }
 0x708   :  { %v1259_v55 = vmul.f32 0.033333335, %v1254_v54  ;;  %v1262_v56 = vsub.f32 %v1251_v47, %v1260_v53 }
 0x70a   :  { %v1261_v57 = vsub.f32 %v1250_v49, %v1259_v55  ;;  %v1264_v60 = vmul.f32 %v1262_v56, %v1262_v56 }
 0x70c   :  { %v1263_v58 = vmul.f32 %v1261_v57, %v1261_v57  ;;  %v1268_v15 = vsel %vm396_vm2, %v1264_v60, 0.0 }
 0x70e   :  { %v1265_v59 = vsel %vm396_vm2, %v1263_v58, 0.0 }
 0x70f   :  { %1266 = vadd.xlane.f32.xlu0 %v1265_v59 }
 0x713   :  { %1269 = vadd.xlane.f32.xlu0 %v1268_v15 }
 0x798   :  { %v1267_v0 = vpop.xlane.xlu0 %1266 }
 0x799   :  { %v1271_v1 = vmul.f32 0.033333335, %v1267_v0 }
 0x79b   :  { %v1273_v2 = vadd.f32 1e-05, %v1271_v1 }
 0x79c   :  { %v1270_v3 = vpop.xlane.xlu0 %1269 }
 0x79d   :  { %4157 = vrsqrt.f32 %v1273_v2  ;;  %v1272_v5 = vmul.f32 0.033333335, %v1270_v3 }
 0x79f   :  { %v1274_v6 = vadd.f32 1e-05, %v1272_v5 }
 0x7a1   :  { %4159 = vrsqrt.f32 %v1274_v6 }
 0x7aa   :  { %v4158_v7 = vpop.eup %4157 }
 0x7ab   :  { %v1277_v9 = vmul.f32 %v4158_v7, %v1261_v57 }
 0x7ad   :  { %v1286_v12 = vmul.f32 %v3455_v8, %v1277_v9 }
 0x7ae   :  { %v4160_v13 = vpop.eup %4159 }
 0x7af   :  { %v1278_v16 = vmul.f32 %v4160_v13, %v1262_v56  ;;  %v4911_v17 = vadd.f32 %v3456_v11, %v1286_v12 }
 0x7b1   :  { %v1287_v18 = vmul.f32 %v3455_v8, %v1278_v16  ;;  %3777 = vmatprep.mubr.msk.f32.mxu1 %vm396_vm2, %v4911_v17 }
 0x7b3   :  { %v4915_v19 = vadd.f32 %v3456_v11, %v1287_v18 }
 0x7b5   :  { %3778 = vmatmul.mubr.msk.f32.vlgmr.msra.gmra.mxu1 %vm396_vm2, %v4915_v19 }
 0x7b6   :  { %3787 = vmatprep.mubr.msk.f32.mxu1 %vm4569_vm3, %v4568_v10 }
 0x875   :  { %v3779_v21 = vpop.f32.mrf.mxu1 }
 0x876   :  { %v4924_v22 = vadd.f32 %v3779_v21, %v3457_v20 }
 0x877   :  { %v1383_v23 = vpop.f32.mrf.mxu1 }
 0x878   :  { %v4926_v24 = vadd.f32 %v3457_v20, %v1383_v23  ;;  %1475 = vrot.lane.b32.xlu1 %v4924_v22, %s4570_s1  ;;  %v1393_v26 = vmul.f32 0.2581989, %v4924_v22  ;;  %v1747_v0 = vmul.f32 %v4924_v22, %v4856_v50  ;;  %v1575_v3 = vmul.f32 %v4924_v22, %v4868_v4 }
 0x87a   :  { %1397 = vrot.lane.b32.xlu0 %v4926_v24, %s4570_s1  ;;  %v1392_v27 = vmul.f32 0.2581989, %v4926_v24  ;;  %v1395_v30 = vmul.f32 %v4820_v25, %v1393_v26  ;;  %v1577_v33 = vmul.f32 %v4828_v29, %v1393_v26  ;;  %v1746_v1 = vmul.f32 %v4926_v24, %v4856_v50  ;;  %v2058_v26 = vld [vmem:[#allocation11 + $0x10] sm:$0xff]  ;;  %s3414_s1 = sshll.u32 %s4573_s30, 4  ;;  %s3415_s1 = int_to_ptr.vmem [resolvable:$true] %s3414_s1 }
 0x87b   :  { %v1574_v2 = vmul.f32 %v4926_v24, %v4868_v4  ;;  %v2059_v24 = vld [vmem:[#allocation11 + $0x18] sm:$0x3f]  ;;  %p4518_p6 = scmp.lt.s32.totalorder %s3415_s1, %s3415_s1 }
 0x87c   :  { %v1394_v32 = vmul.f32 %v4820_v25, %v1392_v27  ;;  %v1576_v25 = vmul.f32 %v4828_v29, %v1392_v27  ;;  %v2057_v27 = vld [vmem:[#allocation11 + $0x8] sm:$0xff] }
 0x8ea   :  { %v1476_v28 = vpop.permute.xlu1 %1475 }
 0x8eb   :  { %3786 = vmatpush3.xpose.msk.msra.mxu1 %vm396_vm2, %v1476_v28 }
 0x8ec   :  { %v1398_v31 = vpop.permute.xlu0 %1397  ;;  %3795 = vmatprep.subr.mxu1 %v4568_v10 }
 0x8ed   :  { %3781 = vmatpush3.xpose.msk.msra.mxu0 %vm396_vm2, %v1398_v31 }
 0x8ee   :  { %3788 = vmatmul.mubr.msk.f32.vlgmr.msra.gmra.mxu1 %vm396_vm2, %v1395_v30  ;;  %3790 = vmatprep.subr.mxu0 %v4568_v10 }
 0x8ef   :  { %3796 = vmatpush3.xpose.msk.msra.mxu1 %vm396_vm2, %v1476_v28  ;;  %3797 = vmatprep.mubr.msk.f32.mxu1 %vm4569_vm3, %v4568_v10  ;;  %v2056_v28 = vld [vmem:[#allocation11] sm:$0xff] }
 0x8f0   :  { %3783 = vmatmul.mubr.msk.f32.vlgmr.msra.gmra.mxu0 %vm396_vm2, %v1394_v32  ;;  %3805 = vmatprep.subr.mxu1 %v4568_v10 }
 0x8f1   :  { %3791 = vmatpush3.xpose.msk.msra.mxu0 %vm396_vm2, %v1398_v31  ;;  %3792 = vmatprep.mubr.msk.f32.mxu0 %vm4569_vm3, %v4568_v10 }
 0x8f2   :  { %3798 = vmatmul.mubr.msk.f32.vlgmr.msra.gmra.mxu1 %vm396_vm2, %v1577_v33  ;;  %3800 = vmatprep.subr.mxu0 %v4568_v10 }
 0x8f3   :  { %3807 = vmatprep.mubr.msk.f32.mxu1 %vm4569_vm3, %v4568_v10 }
 0x8f4   :  { %3793 = vmatmul.mubr.msk.f32.vlgmr.msra.gmra.mxu0 %vm396_vm2, %v1576_v25 }
 0x8f5   :  { %3802 = vmatprep.mubr.msk.f32.mxu0 %vm4569_vm3, %v4568_v10 }
 0x9ae   :  { %v1548_v34 = vpop.f32.mrf.mxu1 }
 0x9af   :  { %v1555_v44 = vsel %vm642_vm8, %v1548_v34, -inf }
 0x9b0   :  { %v1470_v35 = vpop.f32.mrf.mxu0  ;;  %v3789_v36 = vpop.f32.mrf.mxu1 }
 0x9b1   :  { %v1552_v43 = vsel %vm642_vm8, %v1470_v35, -inf }
 0x9b2   :  { %v3784_v37 = vpop.f32.mrf.mxu0  ;;  %v1720_v38 = vpop.f32.mrf.mxu1 }
 0x9b3   :  { %v1727_v39 = vsel %vm642_vm8, %v1720_v38, -inf }
 0x9b4   :  { %v3799_v29 = vpop.f32.mrf.mxu1  ;;  %1728 = vmax.xlane.f32.xlu0 %v1727_v39  ;;  %v1647_v40 = vpop.f32.mrf.mxu0  ;;  %v3473_v39 = vld [vmem:[#allocation13] ss:$0 sm:$0xff] }
 0x9b5   :  { %v1724_v41 = vsel %vm642_vm8, %v1647_v40, -inf }
 0x9b6   :  { %1725 = vmax.xlane.f32.xlu1 %v1724_v41  ;;  %v3794_v42 = vpop.f32.mrf.mxu0 }
 0x9b8   :  { %1553 = vmax.xlane.f32.xlu0 %v1552_v43 }
 0x9ba   :  { %1556 = vmax.xlane.f32.xlu1 %v1555_v44 }
 0xa3d   :  { %v1729_v45 = vpop.xlane.xlu0 %1728 }
 0xa3e   :  { %v1731_v49 = vsub.f32 %v1720_v38, %v1729_v45 }
 0xa3f   :  { %v1726_v46 = vpop.xlane.xlu1 %1725 }
 0xa40   :  { %v1730_v47 = vsub.f32 %v1647_v40, %v1726_v46  ;;  %v1734_v56 = vmul.f32 1.442695, %v1731_v49 }
 0xa41   :  { %v1554_v48 = vpop.xlane.xlu0 %1553 }
 0xa42   :  { %v1558_v51 = vsub.f32 %v1470_v35, %v1554_v48  ;;  %v1732_v52 = vmul.f32 1.442695, %v1730_v47 }
 0xa43   :  { %v1557_v53 = vpop.xlane.xlu1 %1556 }
 0xa44   :  { %v1560_v54 = vmul.f32 1.442695, %v1558_v51  ;;  %v1559_v55 = vsub.f32 %v1548_v34, %v1557_v53 }
 0xa46   :  { %4161 = vpow2.f32 %v1560_v54  ;;  %v1562_v57 = vmul.f32 1.442695, %v1559_v55 }
 0xa47   :  { %4163 = vpow2.f32 %v1732_v52 }
 0xa48   :  { %4165 = vpow2.f32 %v1562_v57  ;;  %v5017_v57 = vld [vmem:[%s5431_s16 + $0x30] sm:$0xff] }
 0xa49   :  { %4167 = vpow2.f32 %v1734_v56  ;;  %v5012_v56 = vld [vmem:[%s5431_s16 + $0x38] sm:$0xff] }
 0xa53   :  { %v4162_v58 = vpop.eup %4161 }
 0xa54   :  { %v4164_v59 = vpop.eup %4163  ;;  %v1564_v60 = vsel %vm642_vm8, %v4162_v58, 0.0 }
 0xa55   :  { %v4166_v15 = vpop.eup %4165  ;;  %1565 = vadd.xlane.f32.xlu0 %v1564_v60  ;;  %v1736_v62 = vsel %vm642_vm8, %v4164_v59, 0.0  ;;  %v5024_v60 = vld [vmem:[%s5431_s16 + $0x28] sm:$0xff] }
 0xa56   :  { %v1567_v61 = vsel %vm642_vm8, %v4166_v15, 0.0  ;;  %v4168_v14 = vpop.eup %4167 }
 0xa57   :  { %1568 = vadd.xlane.f32.xlu1 %v1567_v61  ;;  %v1739_v63 = vsel %vm642_vm8, %v4168_v14, 0.0  ;;  %v5033_v61 = vld [vmem:[%s5431_s16 + $0x20] sm:$0xff] }
 0xa59   :  { %1737 = vadd.xlane.f32.xlu0 %v1736_v62  ;;  %v5040_v62 = vld [vmem:[%s5431_s16 + $0x18] sm:$0xff] }
 0xa5b   :  { %1740 = vadd.xlane.f32.xlu1 %v1739_v63  ;;  %v5047_v63 = vld [vmem:[%s5431_s16 + $0x10] sm:$0xff] }
 0xa6c   :  { %1826 = vrot.lane.b32.xlu1 %v1747_v0, %s4572_s11  ;;  %v5054_v0 = vld [vmem:[%s5431_s16 + $0x8] sm:$0xff] }
 0xa6f   :  { %1749 = vrot.lane.b32.xlu0 %v1746_v1, %s4572_s11  ;;  %v5064_v1 = vld [vmem:[%s5431_s16] sm:$0xff] }
 0xa70   :  { %1903 = vrot.lane.b32.xlu1 %v1574_v2, %s4572_s11 }
 0xa73   :  { %1980 = vrot.lane.b32.xlu0 %v1575_v3, %s4572_s11 }
 0xade   :  { %v1566_v5 = vpop.xlane.xlu0 %1565 }
 0xae0   :  { %v1569_v6 = vpop.xlane.xlu1 %1568 }
 0xae2   :  { %v1738_v7 = vpop.xlane.xlu0 %1737 }
 0xae3   :  { %4169 = vrcp.f32 %v1738_v7 }
 0xae4   :  { %4171 = vrcp.f32 %v1566_v5  ;;  %v1741_v8 = vpop.xlane.xlu1 %1740 }
 0xae5   :  { %4173 = vrcp.f32 %v1741_v8 }
 0xae6   :  { %v1750_v50 = vpop.permute.xlu0 %1749  ;;  %4175 = vrcp.f32 %v1569_v6 }
 0xae7   :  { %3801 = vmatpush3.msra.mxu0 %v1750_v50 }
 0xae8   :  { %v1827_v9 = vpop.permute.xlu1 %1826  ;;  %3810 = vmatprep.subr.mxu0 %v4568_v10 }
 0xae9   :  { %3806 = vmatpush3.msra.mxu1 %v1827_v9 }
 0xaea   :  { %3815 = vmatprep.subr.mxu1 %v4568_v10  ;;  %v1981_v21 = vpop.permute.xlu0 %1980 }
 0xaec   :  { %v1904_v16 = vpop.permute.xlu1 %1903 }
 0xaf0   :  { %v4170_v11 = vpop.eup %4169 }
 0xaf1   :  { %v4172_v4 = vpop.eup %4171  ;;  %v1744_v12 = vmul.f32 %v4170_v11, %v4164_v59  ;;  %v2199_v59 = vld [vmem:[#allocation17 + $0x10] sm:$0xff]  ;;  %v3477_v11 = vld [vmem:[#allocation14] ss:$0 sm:$0xff] }
 0xaf2   :  { %v4174_v13 = vpop.eup %4173  ;;  %v1572_v22 = vmul.f32 %v4172_v4, %v4162_v58  ;;  %v2200_v58 = vld [vmem:[#allocation17 + $0x18] sm:$0x3f] }
 0xaf3   :  { %3803 = vmatmul.mubr.msk.f32.vlgmr.msra.gmra.mxu0 %vm642_vm8, %v1744_v12  ;;  %v1745_v18 = vmul.f32 %v4174_v13, %v4168_v14  ;;  %v4176_v20 = vpop.eup %4175  ;;  %v2197_v14 = vld [vmem:[#allocation17] sm:$0xff] }
 0xaf4   :  { %3811 = vmatpush3.msra.mxu0 %v1904_v16  ;;  %3812 = vmatprep.mubr.msk.f32.mxu0 %vm4569_vm3, %v4568_v10  ;;  %v1573_v23 = vmul.f32 %v4176_v20, %v4166_v15  ;;  %v2198_v15 = vld [vmem:[#allocation17 + $0x8] sm:$0xff] }
 0xaf5   :  { %3808 = vmatmul.mubr.msk.f32.vlgmr.msra.gmra.mxu1 %vm642_vm8, %v1745_v18  ;;  %3820 = vmatprep.subr.msk.mxu0 %vm403_vm1, %v2059_v24  ;;  %v3478_v18 = vld [vmem:[#allocation16] ss:$0 sm:$0xff] }
 0xaf6   :  { %3816 = vmatpush3.msra.mxu1 %v1981_v21  ;;  %3817 = vmatprep.mubr.msk.f32.mxu1 %vm4569_vm3, %v4568_v10 }
 0xaf7   :  { %3813 = vmatmul.mubr.msk.f32.vlgmr.msra.gmra.mxu0 %vm642_vm8, %v1572_v22  ;;  %3831 = vmatprep.subr.msk.mxu1 %vm403_vm1, %v2200_v58 }
 0xaf8   :  { %3821 = vmatpush3.msk.msra.mxu0 %vm403_vm1, %v2059_v24  ;;  %v3479_v24 = vld [vmem:[#allocation19] ss:$0 sm:$0xff] }
 0xaf9   :  { %3818 = vmatmul.mubr.msk.f32.vlgmr.msra.gmra.mxu1 %vm642_vm8, %v1573_v23  ;;  %3822 = vmatprep.subr.mxu0 %v2058_v26 }
 0xafa   :  { %3823 = vmatpush3.msra.mxu0 %v2058_v26  ;;  %3832 = vmatpush3.msk.msra.mxu1 %vm403_vm1, %v2200_v58 }
 0xafb   :  { %3824 = vmatprep.subr.mxu0 %v2057_v27  ;;  %3833 = vmatprep.subr.mxu1 %v2199_v59 }
 0xafc   :  { %3825 = vmatpush3.msra.mxu0 %v2057_v27  ;;  %3834 = vmatpush3.msra.mxu1 %v2199_v59  ;;  %v3483_v27 = vld [vmem:[#allocation20] ss:$0 sm:$0xff] }
 0xafd   :  { %3826 = vmatprep.subr.mxu0 %v2056_v28  ;;  %3835 = vmatprep.subr.mxu1 %v2198_v15 }
 0xafe   :  { %3827 = vmatpush3.msra.mxu0 %v2056_v28  ;;  %3836 = vmatpush3.msra.mxu1 %v2198_v15 }
 0xaff   :  { %3842 = vmatprep.subr.mxu0 %v4568_v10  ;;  %3837 = vmatprep.subr.mxu1 %v2197_v14 }
 0xb00   :  { %3838 = vmatpush3.msra.mxu1 %v2197_v14 }
 0xb01   :  { %3861 = vmatprep.subr.mxu1 %v4568_v10 }
 0xbb3   :  { %v1821_v30 = vpop.f32.mrf.mxu0 }
 0xbb5   :  { %v3804_v31 = vpop.f32.mrf.mxu0  ;;  %v1898_v32 = vpop.f32.mrf.mxu1 }
 0xbb7   :  { %v3809_v33 = vpop.f32.mrf.mxu1  ;;  %v1975_v25 = vpop.f32.mrf.mxu0 }
 0xbb8   :  { %v1976_v34 = vadd.f32 %v1975_v25, %v1821_v30 }
 0xbb9   :  { %v3814_v35 = vpop.f32.mrf.mxu0  ;;  %v2052_v36 = vpop.f32.mrf.mxu1 }
 0xbba   :  { %v2053_v37 = vadd.f32 %v2052_v36, %v1898_v32  ;;  %3828 = vmatprep.mubr.msk.f32.mxu0 %vm396_vm2, %v1976_v34 }
 0xbbb   :  { %v3819_v38 = vpop.f32.mrf.mxu1 }
 0xbbc   :  { %3829 = vmatmul.mubr.msk.f32.vlgmr.msra.gmra.mxu0 %vm396_vm2, %v2053_v37 }
 0xbbd   :  { %3858 = vmatprep.mubr.msk.f32.mxu0 %vm4569_vm3, %v4568_v10  ;;  %3843 = vmatpush3.msra.mxu0 %v5012_v56 }
 0xbbe   :  { %3844 = vmatprep.subr.mxu0 %v4568_v10 }
 0xbbf   :  { %3845 = vmatpush3.msra.mxu0 %v5017_v57 }
 0xbc0   :  { %3846 = vmatprep.subr.mxu0 %v4568_v10 }
 0xbc1   :  { %3847 = vmatpush3.msra.mxu0 %v5024_v60 }
 0xbc2   :  { %3848 = vmatprep.subr.mxu0 %v4568_v10 }
 0xbc3   :  { %3849 = vmatpush3.msra.mxu0 %v5033_v61 }
 0xbc4   :  { %3850 = vmatprep.subr.mxu0 %v4568_v10 }
 0xbc5   :  { %3851 = vmatpush3.msra.mxu0 %v5040_v62 }
 0xbc6   :  { %3852 = vmatprep.subr.mxu0 %v4568_v10 }
 0xbc7   :  { %3853 = vmatpush3.msra.mxu0 %v5047_v63 }
 0xbc8   :  { %3854 = vmatprep.subr.mxu0 %v4568_v10 }
 0xbc9   :  { %3855 = vmatpush3.msra.mxu0 %v5054_v0 }
 0xbca   :  { %3856 = vmatprep.subr.mxu0 %v4568_v10 }
 0xbcb   :  { %3857 = vmatpush3.msra.mxu0 %v5064_v1 }
 0xbcc   :  { %3859 = vmatmul.mubr.f32.vlgmr.msra.gmra.mxu0 %v4568_v10  ;;  %3880 = vmatprep.subr.mxu0 %v4568_v10 }
 0xbcd   :  { %3881 = vmatpush3.msra.mxu0 %v5012_v56  ;;  %3896 = vmatprep.mubr.msk.f32.mxu0 %vm4569_vm3, %v4568_v10 }
 0xbce   :  { %3882 = vmatprep.subr.mxu0 %v4568_v10 }
 0xbcf   :  { %3883 = vmatpush3.msra.mxu0 %v5017_v57 }
 0xbd0   :  { %3884 = vmatprep.subr.mxu0 %v4568_v10 }
 0xbd1   :  { %3885 = vmatpush3.msra.mxu0 %v5024_v60 }
 0xbd2   :  { %3886 = vmatprep.subr.mxu0 %v4568_v10 }
 0xbd3   :  { %3887 = vmatpush3.msra.mxu0 %v5033_v61 }
 0xbd4   :  { %3888 = vmatprep.subr.mxu0 %v4568_v10 }
 0xbd5   :  { %3889 = vmatpush3.msra.mxu0 %v5040_v62 }
 0xbd6   :  { %3890 = vmatprep.subr.mxu0 %v4568_v10 }
 0xbd7   :  { %3891 = vmatpush3.msra.mxu0 %v5047_v63 }
 0xbd8   :  { %3892 = vmatprep.subr.mxu0 %v4568_v10 }
 0xbd9   :  { %3893 = vmatpush3.msra.mxu0 %v5054_v0 }
 0xbda   :  { %3894 = vmatprep.subr.mxu0 %v4568_v10 }
 0xbdb   :  { %3895 = vmatpush3.msra.mxu0 %v5064_v1 }
 0xbdc   :  { %3918 = vmatprep.subr.mxu0 %v4568_v10 }
 0xc7c   :  { %v3830_v29 = vpop.f32.mrf.mxu0 }
 0xc7d   :  { %v2148_v40 = vadd.f32 %v3830_v29, %v3473_v39 }
 0xc7e   :  { %v2142_v41 = vpop.f32.mrf.mxu0 }
 0xc7f   :  { %v2143_v42 = vadd.f32 %v3473_v39, %v2142_v41  ;;  %v2152_v43 = vadd.f32 %v2148_v40, %v4915_v19 }
 0xc81   :  { %v2156_v44 = vsel %vm396_vm2, %v2152_v43, 0.0  ;;  %v2151_v45 = vadd.f32 %v2143_v42, %v4911_v17 }
 0xc82   :  { %2157 = vadd.xlane.f32.xlu0 %v2156_v44 }
 0xc83   :  { %v2153_v46 = vsel %vm396_vm2, %v2151_v45, 0.0 }
 0xc84   :  { %2154 = vadd.xlane.f32.xlu1 %v2153_v46 }
 0xc8c   :  { %v2379_v22 = vpop.f32.mrf.mxu0 }
 0xc8d   :  { %v2384_v30 = vrot.slane %v2379_v22, 1 }
 0xc8e   :  { %v3860_v23 = vpop.f32.mrf.mxu0 }
 0xd0b   :  { %v2158_v47 = vpop.xlane.xlu0 %2157 }
 0xd0c   :  { %v2160_v48 = vmul.f32 0.033333335, %v2158_v47 }
 0xd0d   :  { %v2155_v49 = vpop.xlane.xlu1 %2154 }
 0xd0e   :  { %v4999_v51 = vsub.f32 %v2152_v43, %v2160_v48  ;;  %v2159_v52 = vmul.f32 0.033333335, %v2155_v49 }
 0xd10   :  { %v5001_v53 = vsub.f32 %v2151_v45, %v2159_v52  ;;  %v2164_v54 = vmul.f32 %v4999_v51, %v4999_v51 }
 0xd12   :  { %v2168_v19 = vsel %vm396_vm2, %v2164_v54, 0.0  ;;  %v2163_v17 = vmul.f32 %v5001_v53, %v5001_v53 }
 0xd13   :  { %2169 = vadd.xlane.f32.xlu1 %v2168_v19 }
 0xd14   :  { %v2165_v55 = vsel %vm396_vm2, %v2163_v17, 0.0 }
 0xd15   :  { %2166 = vadd.xlane.f32.xlu0 %v2165_v55 }
 0xd9c   :  { %v2170_v2 = vpop.xlane.xlu1 %2169 }
 0xd9d   :  { %v2172_v3 = vmul.f32 0.033333335, %v2170_v2 }
 0xd9e   :  { %v2167_v5 = vpop.xlane.xlu0 %2166 }
 0xd9f   :  { %v2174_v6 = vadd.f32 1e-05, %v2172_v3  ;;  %v2171_v7 = vmul.f32 0.033333335, %v2167_v5 }
 0xda1   :  { %4177 = vrsqrt.f32 %v2174_v6  ;;  %v2173_v8 = vadd.f32 1e-05, %v2171_v7 }
 0xda3   :  { %4179 = vrsqrt.f32 %v2173_v8 }
 0xdae   :  { %v4178_v50 = vpop.eup %4177 }
 0xdaf   :  { %v2178_v9 = vmul.f32 %v4178_v50, %v4999_v51 }
 0xdb0   :  { %v4180_v4 = vpop.eup %4179 }
 0xdb1   :  { %v2177_v12 = vmul.f32 %v4180_v4, %v5001_v53  ;;  %v2187_v13 = vmul.f32 %v3477_v11, %v2178_v9 }
 0xdb3   :  { %v2186_v16 = vmul.f32 %v3477_v11, %v2177_v12  ;;  %v2196_v21 = vadd.f32 %v3478_v18, %v2187_v13 }
 0xdb5   :  { %v2195_v20 = vadd.f32 %v3478_v18, %v2186_v16 }
 0xdb7   :  { %3839 = vmatprep.mubr.msk.f32.mxu1 %vm396_vm2, %v2195_v20 }
 0xdb8   :  { %3840 = vmatmul.mubr.msk.f32.vlgmr.msra.gmra.mxu1 %vm396_vm2, %v2196_v21 }
 0xdb9   :  { %3862 = vmatpush3.msra.mxu1 %v5012_v56  ;;  %3877 = vmatprep.mubr.msk.f32.mxu1 %vm4569_vm3, %v4568_v10 }
 0xdba   :  { %3863 = vmatprep.subr.mxu1 %v4568_v10 }
 0xdbb   :  { %3864 = vmatpush3.msra.mxu1 %v5017_v57 }
 0xdbc   :  { %3865 = vmatprep.subr.mxu1 %v4568_v10 }
 0xdbd   :  { %3866 = vmatpush3.msra.mxu1 %v5024_v60 }
 0xdbe   :  { %3867 = vmatprep.subr.mxu1 %v4568_v10 }
 0xdbf   :  { %3868 = vmatpush3.msra.mxu1 %v5033_v61 }
 0xdc0   :  { %3869 = vmatprep.subr.mxu1 %v4568_v10 }
 0xdc1   :  { %3870 = vmatpush3.msra.mxu1 %v5040_v62 }
 0xdc2   :  { %3871 = vmatprep.subr.mxu1 %v4568_v10 }
 0xdc3   :  { %3872 = vmatpush3.msra.mxu1 %v5047_v63 }
 0xdc4   :  { %3873 = vmatprep.subr.mxu1 %v4568_v10 }
 0xdc5   :  { %3874 = vmatpush3.msra.mxu1 %v5054_v0 }
 0xdc6   :  { %3875 = vmatprep.subr.mxu1 %v4568_v10 }
 0xdc7   :  { %3876 = vmatpush3.msra.mxu1 %v5064_v1 }
 0xdc8   :  { %3899 = vmatprep.subr.mxu1 %v4568_v10 }
 0xe78   :  { %v3841_v26 = vpop.f32.mrf.mxu1 }
 0xe79   :  { %v2289_v28 = vadd.f32 %v3841_v26, %v3479_v24 }
 0xe7a   :  { %v2283_v31 = vpop.f32.mrf.mxu1 }
 0xe7b   :  { %v5109_v32 = vadd.f32 %v3483_v27, %v2289_v28  ;;  %v2284_v33 = vadd.f32 %v3479_v24, %v2283_v31 }
 0xe7d   :  { %v2388_v25 = vadd.f32 %v2384_v30, %v5109_v32  ;;  %v5112_v34 = vadd.f32 %v3483_v27, %v2284_v33 }
 0xe7f   :  { %4181 = vtanh.f32 %v2388_v25  ;;  %v2387_v35 = vadd.f32 %v2379_v22, %v5112_v34 }
 0xe81   :  { %4183 = vtanh.f32 %v2387_v35 }
 0xe8c   :  { %v5115_v36 = vpop.eup %4181 }
 0xe8d   :  { %v2395_v37 = vrot.slane %v5115_v36, 7 }
 0xe8e   :  { %v4184_v38 = vpop.eup %4183 }
 0xe8f   :  { %v2397_v39 = vsel %vm2396_vm9, %v2395_v37, %v4184_v38 }
 0xe90   :  { %3878 = vmatmul.mubr.msk.f32.vlgmr.msra.gmra.mxu1 %vm2309_vm10, %v2397_v39 }
 0xe91   :  { %3900 = vmatpush3.msra.mxu1 %v5012_v56  ;;  %3915 = vmatprep.mubr.msk.f32.mxu1 %vm4569_vm3, %v4568_v10 }
 0xe92   :  { %3901 = vmatprep.subr.mxu1 %v4568_v10 }
 0xe93   :  { %3902 = vmatpush3.msra.mxu1 %v5017_v57 }
 0xe94   :  { %3903 = vmatprep.subr.mxu1 %v4568_v10 }
 0xe95   :  { %3904 = vmatpush3.msra.mxu1 %v5024_v60 }
 0xe96   :  { %3905 = vmatprep.subr.mxu1 %v4568_v10 }
 0xe97   :  { %3906 = vmatpush3.msra.mxu1 %v5033_v61 }
 0xe98   :  { %3907 = vmatprep.subr.mxu1 %v4568_v10 }
 0xe99   :  { %3908 = vmatpush3.msra.mxu1 %v5040_v62 }
 0xe9a   :  { %3909 = vmatprep.subr.mxu1 %v4568_v10 }
 0xe9b   :  { %3910 = vmatpush3.msra.mxu1 %v5047_v63 }
 0xe9c   :  { %3911 = vmatprep.subr.mxu1 %v4568_v10 }
 0xe9d   :  { %3912 = vmatpush3.msra.mxu1 %v5054_v0 }
 0xe9e   :  { %3913 = vmatprep.subr.mxu1 %v4568_v10 }
 0xe9f   :  { %3914 = vmatpush3.msra.mxu1 %v5064_v1 }
 0xea0   :  { %3937 = vmatprep.subr.mxu1 %v4568_v10 }
 0xf50   :  { %v2466_v29 = vpop.f32.mrf.mxu1 }
 0xf51   :  { %v2471_v40 = vrot.slane %v2466_v29, 7  ;;  %v2475_v43 = vadd.f32 %v2466_v29, %v5109_v32 }
 0xf52   :  { %v3879_v41 = vpop.f32.mrf.mxu1 }
 0xf53   :  { %v2474_v42 = vadd.f32 %v2471_v40, %v5112_v34 }
 0xf55   :  { %4185 = vtanh.f32 %v2474_v42 }
 0xf56   :  { %4187 = vtanh.f32 %v2475_v43 }
 0xf62   :  { %v4186_v44 = vpop.eup %4185 }
 0xf63   :  { %v2480_v45 = vrot.slane %v4186_v44, 1  ;;  %v4188_v46 = vpop.eup %4187 }
 0xf64   :  { %v2481_v19 = vrot.slane %v4188_v46, 1 }
 0xf65   :  { %v2486_v47 = vsel %vm2396_vm9, %v4188_v46, %v2480_v45  ;;  %v2484_v58 = vadd.f32 %v4184_v38, %v2480_v45 }
 0xf66   :  { %3897 = vmatmul.mubr.msk.f32.vlgmr.msra.gmra.mxu0 %vm2309_vm10, %v2486_v47  ;;  %v2485_v15 = vadd.f32 %v5115_v36, %v2481_v19 }
 0xf67   :  { %3919 = vmatpush3.msra.mxu0 %v5012_v56  ;;  %3934 = vmatprep.mubr.msk.f32.mxu0 %vm4569_vm3, %v4568_v10 }
 0xf68   :  { %3920 = vmatprep.subr.mxu0 %v4568_v10 }
 0xf69   :  { %3921 = vmatpush3.msra.mxu0 %v5017_v57 }
 0xf6a   :  { %3922 = vmatprep.subr.mxu0 %v4568_v10 }
 0xf6b   :  { %3923 = vmatpush3.msra.mxu0 %v5024_v60 }
 0xf6c   :  { %3924 = vmatprep.subr.mxu0 %v4568_v10 }
 0xf6d   :  { %3925 = vmatpush3.msra.mxu0 %v5033_v61 }
 0xf6e   :  { %3926 = vmatprep.subr.mxu0 %v4568_v10 }
 0xf6f   :  { %3927 = vmatpush3.msra.mxu0 %v5040_v62 }
 0xf70   :  { %3928 = vmatprep.subr.mxu0 %v4568_v10 }
 0xf71   :  { %3929 = vmatpush3.msra.mxu0 %v5047_v63 }
 0xf72   :  { %3930 = vmatprep.subr.mxu0 %v4568_v10 }
 0xf73   :  { %3931 = vmatpush3.msra.mxu0 %v5054_v0 }
 0xf74   :  { %3932 = vmatprep.subr.mxu0 %v4568_v10 }
 0xf75   :  { %3933 = vmatpush3.msra.mxu0 %v5064_v1 }
 0xf76   :  { %3956 = vmatprep.subr.mxu0 %v4568_v10 }
0x1026   :  { %v2555_v48 = vpop.f32.mrf.mxu0 }
0x1027   :  { %v2560_v49 = vrot.slane %v2555_v48, 6  ;;  %v2561_v51 = vrot.slane %v2555_v48, 7 }
0x1028   :  { %v3898_v52 = vpop.f32.mrf.mxu0 }
0x1029   :  { %v2564_v53 = vadd.f32 %v2560_v49, %v5112_v34  ;;  %v2565_v54 = vadd.f32 %v2561_v51, %v5109_v32 }
0x102b   :  { %4189 = vtanh.f32 %v2564_v53 }
0x102c   :  { %4191 = vtanh.f32 %v2565_v54 }
0x1038   :  { %v4190_v17 = vpop.eup %4189 }
0x1039   :  { %v4192_v55 = vpop.eup %4191  ;;  %v2570_v59 = vrot.slane %v4190_v17, 2 }
0x103a   :  { %v2571_v14 = vrot.slane %v4192_v55, 2  ;;  %v2576_v2 = vrot.slane %v4192_v55, 1 }
0x103b   :  { %v2574_v3 = vadd.f32 %v2570_v59, %v2484_v58 }
0x103c   :  { %v2577_v5 = vsel %vm2396_vm9, %v2576_v2, %v2570_v59  ;;  %v2575_v6 = vadd.f32 %v2571_v14, %v2485_v15  ;;  %v3040_v14 = vld [vmem:[#allocation22 + $0x38] sm:$0xff]  ;;  %v3039_v2 = vld [vmem:[#allocation22 + $0x30] sm:$0xff] }
0x103d   :  { %3916 = vmatmul.mubr.msk.f32.vlgmr.msra.gmra.mxu1 %vm2309_vm10, %v2577_v5  ;;  %v3037_v5 = vld [vmem:[#allocation22 + $0x20] sm:$0xff] }
0x103e   :  { %3938 = vmatpush3.msra.mxu1 %v5012_v56  ;;  %3953 = vmatprep.mubr.msk.f32.mxu1 %vm4569_vm3, %v4568_v10 }
0x103f   :  { %3939 = vmatprep.subr.mxu1 %v4568_v10 }
0x1040   :  { %3940 = vmatpush3.msra.mxu1 %v5017_v57 }
0x1041   :  { %3941 = vmatprep.subr.mxu1 %v4568_v10 }
0x1042   :  { %3942 = vmatpush3.msra.mxu1 %v5024_v60 }
0x1043   :  { %3943 = vmatprep.subr.mxu1 %v4568_v10 }
0x1044   :  { %3944 = vmatpush3.msra.mxu1 %v5033_v61 }
0x1045   :  { %3945 = vmatprep.subr.mxu1 %v4568_v10 }
0x1046   :  { %3946 = vmatpush3.msra.mxu1 %v5040_v62 }
0x1047   :  { %3947 = vmatprep.subr.mxu1 %v4568_v10 }
0x1048   :  { %3948 = vmatpush3.msra.mxu1 %v5047_v63 }
0x1049   :  { %3949 = vmatprep.subr.mxu1 %v4568_v10 }
0x104a   :  { %3950 = vmatpush3.msra.mxu1 %v5054_v0 }
0x104b   :  { %3951 = vmatprep.subr.mxu1 %v4568_v10 }
0x104c   :  { %3952 = vmatpush3.msra.mxu1 %v5064_v1 }
0x104d   :  { %3975 = vmatprep.subr.mxu1 %v4568_v10 }
0x10fd   :  { %v2646_v7 = vpop.f32.mrf.mxu1 }
0x10fe   :  { %v2651_v8 = vrot.slane %v2646_v7, 5  ;;  %v2652_v50 = vrot.slane %v2646_v7, 6  ;;  %v3035_v7 = vld [vmem:[#allocation22 + $0x10] sm:$0xff] }
0x10ff   :  { %v3917_v9 = vpop.f32.mrf.mxu1 }
0x1100   :  { %v2655_v11 = vadd.f32 %v2651_v8, %v5112_v34  ;;  %v2656_v4 = vadd.f32 %v2652_v50, %v5109_v32  ;;  %v3034_v8 = vld [vmem:[#allocation22 + $0x8] sm:$0xff]  ;;  %v3033_v50 = vld [vmem:[#allocation22] sm:$0xff] }
0x1101   :  { %v3140_v9 = vld [vmem:[%s5436_s21 + $0x78] sm:$0xff] }
0x1102   :  { %4193 = vtanh.f32 %v2655_v11  ;;  %v3139_v11 = vld [vmem:[%s5436_s21 + $0x70] sm:$0xff] }
0x1103   :  { %4195 = vtanh.f32 %v2656_v4  ;;  %v3138_v4 = vld [vmem:[%s5436_s21 + $0x68] sm:$0xff] }
0x110f   :  { %v4194_v12 = vpop.eup %4193 }
0x1110   :  { %v4196_v13 = vpop.eup %4195  ;;  %v2661_v16 = vrot.slane %v4194_v12, 3  ;;  %v3137_v12 = vld [vmem:[%s5436_s21 + $0x60] sm:$0xff] }
0x1111   :  { %v2662_v18 = vrot.slane %v4196_v13, 3  ;;  %v2667_v20 = vrot.slane %v4196_v13, 2  ;;  %v3136_v13 = vld [vmem:[%s5436_s21 + $0x58] sm:$0xff] }
0x1112   :  { %v2665_v21 = vadd.f32 %v2661_v16, %v2574_v3  ;;  %v3038_v3 = vld [vmem:[#allocation22 + $0x28] sm:$0xff] }
0x1113   :  { %v2668_v22 = vsel %vm2396_vm9, %v2667_v20, %v2661_v16  ;;  %v2666_v23 = vadd.f32 %v2662_v18, %v2575_v6  ;;  %v3036_v6 = vld [vmem:[#allocation22 + $0x18] sm:$0xff]  ;;  %v3134_v18 = vld [vmem:[%s5436_s21 + $0x48] sm:$0xff]  ;;  %v3133_v20 = vld [vmem:[%s5436_s21 + $0x40] sm:$0xff] }
0x1114   :  { %3935 = vmatmul.mubr.msk.f32.vlgmr.msra.gmra.mxu0 %vm2309_vm10, %v2668_v22  ;;  %v3135_v16 = vld [vmem:[%s5436_s21 + $0x50] sm:$0xff] }
0x1115   :  { %3957 = vmatpush3.msra.mxu0 %v5012_v56  ;;  %3972 = vmatprep.mubr.msk.f32.mxu0 %vm4569_vm3, %v4568_v10  ;;  %v3131_v22 = vld [vmem:[%s5436_s21 + $0x30] sm:$0xff] }
0x1116   :  { %3958 = vmatprep.subr.mxu0 %v4568_v10 }
0x1117   :  { %3959 = vmatpush3.msra.mxu0 %v5017_v57 }
0x1118   :  { %3960 = vmatprep.subr.mxu0 %v4568_v10 }
0x1119   :  { %3961 = vmatpush3.msra.mxu0 %v5024_v60 }
0x111a   :  { %3962 = vmatprep.subr.mxu0 %v4568_v10 }
0x111b   :  { %3963 = vmatpush3.msra.mxu0 %v5033_v61 }
0x111c   :  { %3964 = vmatprep.subr.mxu0 %v4568_v10 }
0x111d   :  { %3965 = vmatpush3.msra.mxu0 %v5040_v62 }
0x111e   :  { %3966 = vmatprep.subr.mxu0 %v4568_v10 }
0x111f   :  { %3967 = vmatpush3.msra.mxu0 %v5047_v63 }
0x1120   :  { %3968 = vmatprep.subr.mxu0 %v4568_v10 }
0x1121   :  { %3969 = vmatpush3.msra.mxu0 %v5054_v0 }
0x1122   :  { %3970 = vmatprep.subr.mxu0 %v4568_v10 }
0x1123   :  { %3971 = vmatpush3.msra.mxu0 %v5064_v1 }
0x1124   :  { %3994 = vmatprep.subr.mxu0 %v4568_v10 }
0x11d4   :  { %v2737_v24 = vpop.f32.mrf.mxu0 }
0x11d5   :  { %v2742_v26 = vrot.slane %v2737_v24, 4  ;;  %v2743_v27 = vrot.slane %v2737_v24, 5  ;;  %v3129_v24 = vld [vmem:[%s5436_s21 + $0x20] sm:$0xff] }
0x11d6   :  { %v3936_v28 = vpop.f32.mrf.mxu0 }
0x11d7   :  { %v2746_v30 = vadd.f32 %v2742_v26, %v5112_v34  ;;  %v2747_v31 = vadd.f32 %v2743_v27, %v5109_v32  ;;  %v3128_v26 = vld [vmem:[%s5436_s21 + $0x18] sm:$0xff] }
0x11d9   :  { %4197 = vtanh.f32 %v2746_v30 }
0x11da   :  { %4199 = vtanh.f32 %v2747_v31 }
0x11e6   :  { %v4198_v33 = vpop.eup %4197 }
0x11e7   :  { %v4200_v25 = vpop.eup %4199  ;;  %v2752_v35 = vrot.slane %v4198_v33, 4 }
0x11e8   :  { %v2758_v36 = vrot.slane %v4200_v25, 3  ;;  %v2753_v37 = vrot.slane %v4200_v25, 4 }
0x11e9   :  { %v2756_v38 = vadd.f32 %v2752_v35, %v2665_v21  ;;  %v3132_v21 = vld [vmem:[%s5436_s21 + $0x38] sm:$0xff] }
0x11ea   :  { %v2759_v39 = vsel %vm2396_vm9, %v2758_v36, %v2752_v35  ;;  %v2757_v29 = vadd.f32 %v2753_v37, %v2666_v23  ;;  %v3130_v23 = vld [vmem:[%s5436_s21 + $0x28] sm:$0xff] }
0x11eb   :  { %3954 = vmatmul.mubr.msk.f32.vlgmr.msra.gmra.mxu1 %vm2309_vm10, %v2759_v39 }
0x11ec   :  { %3976 = vmatpush3.msra.mxu1 %v5012_v56  ;;  %3991 = vmatprep.mubr.msk.f32.mxu1 %vm4569_vm3, %v4568_v10 }
0x11ed   :  { %3977 = vmatprep.subr.mxu1 %v4568_v10 }
0x11ee   :  { %3978 = vmatpush3.msra.mxu1 %v5017_v57 }
0x11ef   :  { %3979 = vmatprep.subr.mxu1 %v4568_v10 }
0x11f0   :  { %3980 = vmatpush3.msra.mxu1 %v5024_v60 }
0x11f1   :  { %3981 = vmatprep.subr.mxu1 %v4568_v10 }
0x11f2   :  { %3982 = vmatpush3.msra.mxu1 %v5033_v61 }
0x11f3   :  { %3983 = vmatprep.subr.mxu1 %v4568_v10 }
0x11f4   :  { %3984 = vmatpush3.msra.mxu1 %v5040_v62 }
0x11f5   :  { %3985 = vmatprep.subr.mxu1 %v4568_v10 }
0x11f6   :  { %3986 = vmatpush3.msra.mxu1 %v5047_v63 }
0x11f7   :  { %3987 = vmatprep.subr.mxu1 %v4568_v10 }
0x11f8   :  { %3988 = vmatpush3.msra.mxu1 %v5054_v0 }
0x11f9   :  { %3989 = vmatprep.subr.mxu1 %v4568_v10 }
0x11fa   :  { %3990 = vmatpush3.msra.mxu1 %v5064_v1 }
0x11fb   :  { %4013 = vmatprep.subr.mxu1 %v4568_v10 }
0x12ab   :  { %v2828_v56 = vpop.f32.mrf.mxu1 }
0x12ac   :  { %v2833_v57 = vrot.slane %v2828_v56, 3  ;;  %v2834_v60 = vrot.slane %v2828_v56, 4 }
0x12ad   :  { %v3955_v61 = vpop.f32.mrf.mxu1 }
0x12ae   :  { %v2837_v62 = vadd.f32 %v2833_v57, %v5112_v34  ;;  %v2838_v40 = vadd.f32 %v2834_v60, %v5109_v32 }
0x12b0   :  { %4201 = vtanh.f32 %v2837_v62  ;;  %v3125_v62 = vld [vmem:[%s5436_s21] sm:$0xff] }
0x12b1   :  { %4203 = vtanh.f32 %v2838_v40  ;;  %v3234_v40 = vld [vmem:[#allocation25 + $0x78] sm:$0xff] }
0x12bd   :  { %v4202_v63 = vpop.eup %4201 }
0x12be   :  { %v4204_v41 = vpop.eup %4203  ;;  %v2843_v42 = vrot.slane %v4202_v63, 5  ;;  %v3233_v63 = vld [vmem:[#allocation25 + $0x70] sm:$0xff] }
0x12bf   :  { %v2849_v0 = vrot.slane %v4204_v41, 4  ;;  %v2844_v43 = vrot.slane %v4204_v41, 5  ;;  %v3232_v41 = vld [vmem:[#allocation25 + $0x68] sm:$0xff] }
0x12c0   :  { %v2847_v44 = vadd.f32 %v2843_v42, %v2756_v38 }
0x12c1   :  { %v2850_v1 = vsel %vm2396_vm9, %v2849_v0, %v2843_v42  ;;  %v2848_v45 = vadd.f32 %v2844_v43, %v2757_v29  ;;  %v3231_v42 = vld [vmem:[#allocation25 + $0x60] sm:$0xff]  ;;  %v3230_v0 = vld [vmem:[#allocation25 + $0x58] sm:$0xff]  ;;  %v3229_v43 = vld [vmem:[#allocation25 + $0x50] sm:$0xff] }
0x12c2   :  { %3973 = vmatmul.mubr.msk.f32.vlgmr.msra.gmra.mxu0 %vm2309_vm10, %v2850_v1  ;;  %v3227_v1 = vld [vmem:[#allocation25 + $0x40] sm:$0xff] }
0x12c3   :  { %4010 = vmatprep.mubr.msk.f32.mxu0 %vm4569_vm3, %v4568_v10  ;;  %3995 = vmatpush3.msra.mxu0 %v3040_v14  ;;  %v3326_v14 = vld [vmem:[%s5440_s25 + $0x68] sm:$0xff] }
0x12c4   :  { %3996 = vmatprep.subr.mxu0 %v4568_v10 }
0x12c5   :  { %3997 = vmatpush3.msra.mxu0 %v3039_v2  ;;  %v3325_v2 = vld [vmem:[%s5440_s25 + $0x60] sm:$0xff] }
0x12c6   :  { %3998 = vmatprep.subr.mxu0 %v4568_v10 }
0x12c7   :  { %3999 = vmatpush3.msra.mxu0 %v3038_v3  ;;  %v3324_v3 = vld [vmem:[%s5440_s25 + $0x58] sm:$0xff] }
0x12c8   :  { %4000 = vmatprep.subr.mxu0 %v4568_v10 }
0x12c9   :  { %4001 = vmatpush3.msra.mxu0 %v3037_v5  ;;  %v3323_v5 = vld [vmem:[%s5440_s25 + $0x50] sm:$0xff] }
0x12ca   :  { %4002 = vmatprep.subr.mxu0 %v4568_v10 }
0x12cb   :  { %4003 = vmatpush3.msra.mxu0 %v3036_v6  ;;  %v3322_v6 = vld [vmem:[%s5440_s25 + $0x48] sm:$0xff] }
0x12cc   :  { %4004 = vmatprep.subr.mxu0 %v4568_v10 }
0x12cd   :  { %4005 = vmatpush3.msra.mxu0 %v3035_v7  ;;  %v3321_v7 = vld [vmem:[%s5440_s25 + $0x40] sm:$0xff] }
0x12ce   :  { %4006 = vmatprep.subr.mxu0 %v4568_v10 }
0x12cf   :  { %4007 = vmatpush3.msra.mxu0 %v3034_v8  ;;  %v3320_v8 = vld [vmem:[%s5440_s25 + $0x38] sm:$0xff] }
0x12d0   :  { %4008 = vmatprep.subr.mxu0 %v4568_v10 }
0x12d1   :  { %4009 = vmatpush3.msra.mxu0 %v3033_v50  ;;  %v3319_v50 = vld [vmem:[%s5440_s25 + $0x30] sm:$0xff] }
0x12d2   :  { %4048 = vmatprep.subr.mxu0 %v4568_v10 }
0x1382   :  { %v2919_v46 = vpop.f32.mrf.mxu0 }
0x1383   :  { %v2924_v47 = vrot.slane %v2919_v46, 2  ;;  %v2925_v48 = vrot.slane %v2919_v46, 3  ;;  %v3225_v46 = vld [vmem:[#allocation25 + $0x30] sm:$0xff] }
0x1384   :  { %v3974_v49 = vpop.f32.mrf.mxu0 }
0x1385   :  { %v2928_v51 = vadd.f32 %v2924_v47, %v5112_v34  ;;  %v2929_v52 = vadd.f32 %v2925_v48, %v5109_v32  ;;  %v3224_v47 = vld [vmem:[#allocation25 + $0x28] sm:$0xff]  ;;  %v3223_v48 = vld [vmem:[#allocation25 + $0x20] sm:$0xff]  ;;  %v3222_v49 = vld [vmem:[#allocation25 + $0x18] sm:$0xff] }
0x1387   :  { %4205 = vtanh.f32 %v2928_v51  ;;  %v3491_v51 = vld [vmem:[#allocation23] ss:$0 sm:$0xff] }
0x1388   :  { %4207 = vtanh.f32 %v2929_v52 }
0x1394   :  { %v4206_v53 = vpop.eup %4205 }
0x1395   :  { %v4208_v54 = vpop.eup %4207  ;;  %v2934_v19 = vrot.slane %v4206_v53, 6 }
0x1396   :  { %v2940_v17 = vrot.slane %v4208_v54, 5  ;;  %v2935_v55 = vrot.slane %v4208_v54, 6 }
0x1397   :  { %v5235_v58 = vadd.f32 %v2934_v19, %v2847_v44  ;;  %v3228_v44 = vld [vmem:[#allocation25 + $0x48] sm:$0xff] }
0x1398   :  { %v2941_v59 = vsel %vm2396_vm9, %v2940_v17, %v2934_v19  ;;  %v5238_v15 = vadd.f32 %v2935_v55, %v2848_v45  ;;  %v3226_v45 = vld [vmem:[#allocation25 + $0x38] sm:$0xff]  ;;  %v3221_v17 = vld [vmem:[#allocation25 + $0x10] sm:$0xff]  ;;  %v3220_v55 = vld [vmem:[#allocation25 + $0x8] sm:$0xff] }
0x1399   :  { %3992 = vmatmul.mubr.msk.f32.vlgmr.msra.gmra.mxu1 %vm2309_vm10, %v2941_v59  ;;  %v3328_v59 = vld [vmem:[%s5440_s25 + $0x78] sm:$0xff] }
0x139a   :  { %4045 = vmatprep.mubr.msk.f32.mxu1 %vm4569_vm3, %v4568_v10  ;;  %4014 = vmatpush3.msra.mxu1 %v3140_v9  ;;  %v3318_v9 = vld [vmem:[%s5440_s25 + $0x28] sm:$0xff] }
0x139b   :  { %4015 = vmatprep.subr.mxu1 %v4568_v10 }
0x139c   :  { %4016 = vmatpush3.msra.mxu1 %v3139_v11  ;;  %v3317_v11 = vld [vmem:[%s5440_s25 + $0x20] sm:$0xff] }
0x139d   :  { %4017 = vmatprep.subr.mxu1 %v4568_v10 }
0x139e   :  { %4018 = vmatpush3.msra.mxu1 %v3138_v4  ;;  %v3316_v4 = vld [vmem:[%s5440_s25 + $0x18] sm:$0xff] }
0x139f   :  { %4019 = vmatprep.subr.mxu1 %v4568_v10 }
0x13a0   :  { %4020 = vmatpush3.msra.mxu1 %v3137_v12  ;;  %v3493_v12 = vld [vmem:[%s5437_s22] ss:$0 sm:$0xff] }
0x13a1   :  { %4021 = vmatprep.subr.mxu1 %v4568_v10 }
0x13a2   :  { %4022 = vmatpush3.msra.mxu1 %v3136_v13 }
0x13a3   :  { %4023 = vmatprep.subr.mxu1 %v4568_v10 }
0x13a4   :  { %4024 = vmatpush3.msra.mxu1 %v3135_v16 }
0x13a5   :  { %4025 = vmatprep.subr.mxu1 %v4568_v10 }
0x13a6   :  { %4026 = vmatpush3.msra.mxu1 %v3134_v18 }
0x13a7   :  { %4027 = vmatprep.subr.mxu1 %v4568_v10 }
0x13a8   :  { %4028 = vmatpush3.msra.mxu1 %v3133_v20 }
0x13a9   :  { %4029 = vmatprep.subr.mxu1 %v4568_v10 }
0x13aa   :  { %4030 = vmatpush3.msra.mxu1 %v3132_v21  ;;  %v3315_v21 = vld [vmem:[%s5440_s25 + $0x10] sm:$0xff] }
0x13ab   :  { %4031 = vmatprep.subr.mxu1 %v4568_v10 }
0x13ac   :  { %4032 = vmatpush3.msra.mxu1 %v3131_v22  ;;  %v3314_v22 = vld [vmem:[%s5440_s25 + $0x8] sm:$0xff] }
0x13ad   :  { %4033 = vmatprep.subr.mxu1 %v4568_v10 }
0x13ae   :  { %4034 = vmatpush3.msra.mxu1 %v3130_v23  ;;  %v3313_v23 = vld [vmem:[%s5440_s25] sm:$0xff] }
0x13af   :  { %4035 = vmatprep.subr.mxu1 %v4568_v10 }
0x13b0   :  { %4036 = vmatpush3.msra.mxu1 %v3129_v24  ;;  %v3494_v24 = vld [vmem:[%s5439_s24] ss:$0 sm:$0xff] }
0x13b1   :  { %4037 = vmatprep.subr.mxu1 %v4568_v10 }
0x13b2   :  { %4038 = vmatpush3.msra.mxu1 %v3128_v26 }
0x13b3   :  { %4039 = vmatprep.subr.mxu1 %v4568_v10 }
0x1459   :  { %v3010_v27 = vpop.f32.mrf.mxu1 }
0x145a   :  { %v3015_v28 = vrot.slane %v3010_v27, 1  ;;  %v3016_v30 = vrot.slane %v3010_v27, 2 }
0x145b   :  { %v3993_v31 = vpop.f32.mrf.mxu1 }
0x145c   :  { %v3019_v33 = vadd.f32 %v3015_v28, %v5112_v34  ;;  %v3020_v25 = vadd.f32 %v3016_v30, %v5109_v32  ;;  %v3127_v32 = vld [vmem:[%s5436_s21 + $0x10] sm:$0xff]  ;;  %v3126_v34 = vld [vmem:[%s5436_s21 + $0x8] sm:$0xff]  ;;  %v3495_v31 = vld [vmem:[%s5441_s26] ss:$0 sm:$0xff] }
0x145d   :  { %4040 = vmatpush3.msra.mxu1 %v3127_v32 }
0x145e   :  { %4209 = vtanh.f32 %v3019_v33  ;;  %4041 = vmatprep.subr.mxu1 %v4568_v10 }
0x145f   :  { %4211 = vtanh.f32 %v3020_v25  ;;  %4042 = vmatpush3.msra.mxu1 %v3126_v34 }
0x1460   :  { %4043 = vmatprep.subr.mxu1 %v4568_v10 }
0x1461   :  { %4044 = vmatpush3.msra.mxu1 %v3125_v62 }
0x1462   :  { %4083 = vmatprep.subr.mxu1 %v4568_v10 }
0x146b   :  { %v4210_v35 = vpop.eup %4209 }
0x146c   :  { %v4212_v36 = vpop.eup %4211  ;;  %v3025_v37 = vrot.slane %v4210_v35, 7 }
0x146d   :  { %v3026_v38 = vrot.slane %v4212_v36, 7 }
0x146e   :  { %v3029_v39 = vadd.f32 %v3025_v37, %v5235_v58  ;;  %v3219_v58 = vld [vmem:[#allocation25] sm:$0xff] }
0x146f   :  { %v3030_v29 = vadd.f32 %v3026_v38, %v5238_v15  ;;  %v3327_v15 = vld [vmem:[%s5440_s25 + $0x70] sm:$0xff]  ;;  %s4513_s25 = scalar_lea.vmem %s3415_s1, 32 }
0x1470   :  { %v3031_v57 = vmul.f32 0.125, %v3029_v39  ;;  %p4514_p5 = scmp.ne.s32.totalorder %s3415_s1, %s4513_s25  ;;  %p4519_p7 = scmp.lt.s32.totalorder %s4513_s25, %s4513_s25 }
0x1471   :  { %v3032_v56 = vmul.f32 0.125, %v3030_v29 }
0x1472   :  { %p4520_p8 = por %p4519_p7, %p4518_p6 }
0x1473   :  { %v3050_v60 = vrot.slane %v3032_v56, 7 }
0x1474   :  { %p4521_p9 = pnand %p4520_p8, %p4514_p5 }
0x1475   :  { %v3051_v61 = vsel %vm2396_vm9, %v3050_v60, %v3031_v57 }
0x1476   :  { %4011 = vmatmul.mubr.msk.f32.vlgmr.msra.gmra.mxu0 %vm2309_vm10, %v3051_v61 }
0x1477   :  { %4080 = vmatprep.mubr.msk.f32.mxu0 %vm4569_vm3, %v4568_v10  ;;  %4049 = vmatpush3.msra.mxu0 %v3234_v40 }
0x1478   :  { %4050 = vmatprep.subr.mxu0 %v4568_v10 }
0x1479   :  { %4051 = vmatpush3.msra.mxu0 %v3233_v63 }
0x147a   :  { %4052 = vmatprep.subr.mxu0 %v4568_v10 }
0x147b   :  { %4053 = vmatpush3.msra.mxu0 %v3232_v41 }
0x147c   :  { %4054 = vmatprep.subr.mxu0 %v4568_v10 }
0x147d   :  { %4055 = vmatpush3.msra.mxu0 %v3231_v42 }
0x147e   :  { %4056 = vmatprep.subr.mxu0 %v4568_v10 }
0x147f   :  { %4057 = vmatpush3.msra.mxu0 %v3230_v0 }
0x1480   :  { %4058 = vmatprep.subr.mxu0 %v4568_v10 }
0x1481   :  { %4059 = vmatpush3.msra.mxu0 %v3229_v43 }
0x1482   :  { %4060 = vmatprep.subr.mxu0 %v4568_v10 }
0x1483   :  { %4061 = vmatpush3.msra.mxu0 %v3228_v44 }
0x1484   :  { %4062 = vmatprep.subr.mxu0 %v4568_v10 }
0x1485   :  { %4063 = vmatpush3.msra.mxu0 %v3227_v1 }
0x1486   :  { %4064 = vmatprep.subr.mxu0 %v4568_v10 }
0x1487   :  { %4065 = vmatpush3.msra.mxu0 %v3226_v45 }
0x1488   :  { %4066 = vmatprep.subr.mxu0 %v4568_v10 }
0x1489   :  { %4067 = vmatpush3.msra.mxu0 %v3225_v46 }
0x148a   :  { %4068 = vmatprep.subr.mxu0 %v4568_v10 }
0x148b   :  { %4069 = vmatpush3.msra.mxu0 %v3224_v47 }
0x148c   :  { %4070 = vmatprep.subr.mxu0 %v4568_v10 }
0x148d   :  { %4071 = vmatpush3.msra.mxu0 %v3223_v48 }
0x148e   :  { %4072 = vmatprep.subr.mxu0 %v4568_v10 }
0x148f   :  { %4073 = vmatpush3.msra.mxu0 %v3222_v49 }
0x1490   :  { %4074 = vmatprep.subr.mxu0 %v4568_v10 }
0x1491   :  { %4075 = vmatpush3.msra.mxu0 %v3221_v17 }
0x1492   :  { %4076 = vmatprep.subr.mxu0 %v4568_v10 }
0x1493   :  { %4077 = vmatpush3.msra.mxu0 %v3220_v55 }
0x1494   :  { %4078 = vmatprep.subr.mxu0 %v4568_v10 }
0x1495   :  { %4079 = vmatpush3.msra.mxu0 %v3219_v58 }
0x1536   :  { %v3120_v52 = vpop.f32.mrf.mxu0 }
0x1537   :  { %v3121_v53 = vadd.f32 %v3491_v51, %v3120_v52 }
0x1538   :  { %v4012_v54 = vpop.f32.mrf.mxu0 }
0x1539   :  { %v3124_v19 = vmax.f32 %v3121_v53, 0.0 }
0x153b   :  { %4046 = vmatmul.mubr.f32.vlgmr.msra.gmra.mxu1 %v3124_v19 }
0x153c   :  { %4115 = vmatprep.mubr.msk.f32.mxu1 %vm4569_vm3, %v4568_v10  ;;  %4084 = vmatpush3.msra.mxu1 %v3328_v59 }
0x153d   :  { %4085 = vmatprep.subr.mxu1 %v4568_v10 }
0x153e   :  { %4086 = vmatpush3.msra.mxu1 %v3327_v15 }
0x153f   :  { %4087 = vmatprep.subr.mxu1 %v4568_v10 }
0x1540   :  { %4088 = vmatpush3.msra.mxu1 %v3326_v14 }
0x1541   :  { %4089 = vmatprep.subr.mxu1 %v4568_v10 }
0x1542   :  { %4090 = vmatpush3.msra.mxu1 %v3325_v2 }
0x1543   :  { %4091 = vmatprep.subr.mxu1 %v4568_v10 }
0x1544   :  { %4092 = vmatpush3.msra.mxu1 %v3324_v3 }
0x1545   :  { %4093 = vmatprep.subr.mxu1 %v4568_v10 }
0x1546   :  { %4094 = vmatpush3.msra.mxu1 %v3323_v5 }
0x1547   :  { %4095 = vmatprep.subr.mxu1 %v4568_v10 }
0x1548   :  { %4096 = vmatpush3.msra.mxu1 %v3322_v6 }
0x1549   :  { %4097 = vmatprep.subr.mxu1 %v4568_v10 }
0x154a   :  { %4098 = vmatpush3.msra.mxu1 %v3321_v7 }
0x154b   :  { %4099 = vmatprep.subr.mxu1 %v4568_v10 }
0x154c   :  { %4100 = vmatpush3.msra.mxu1 %v3320_v8 }
0x154d   :  { %4101 = vmatprep.subr.mxu1 %v4568_v10 }
0x154e   :  { %4102 = vmatpush3.msra.mxu1 %v3319_v50 }
0x154f   :  { %4103 = vmatprep.subr.mxu1 %v4568_v10 }
0x1550   :  { %4104 = vmatpush3.msra.mxu1 %v3318_v9 }
0x1551   :  { %4105 = vmatprep.subr.mxu1 %v4568_v10 }
0x1552   :  { %4106 = vmatpush3.msra.mxu1 %v3317_v11 }
0x1553   :  { %4107 = vmatprep.subr.mxu1 %v4568_v10 }
0x1554   :  { %4108 = vmatpush3.msra.mxu1 %v3316_v4 }
0x1555   :  { %4109 = vmatprep.subr.mxu1 %v4568_v10 }
0x1556   :  { %4110 = vmatpush3.msra.mxu1 %v3315_v21 }
0x1557   :  { %4111 = vmatprep.subr.mxu1 %v4568_v10 }
0x1558   :  { %4112 = vmatpush3.msra.mxu1 %v3314_v22 }
0x1559   :  { %4113 = vmatprep.subr.mxu1 %v4568_v10 }
0x155a   :  { %4114 = vmatpush3.msra.mxu1 %v3313_v23 }
0x15fb   :  { %v3214_v13 = vpop.f32.mrf.mxu1 }
0x15fc   :  { %v3215_v16 = vadd.f32 %v3493_v12, %v3214_v13 }
0x15fd   :  { %v4047_v18 = vpop.f32.mrf.mxu1 }
0x15fe   :  { %v3218_v20 = vmax.f32 %v3215_v16, 0.0 }
0x1600   :  { %4081 = vmatmul.mubr.f32.vlgmr.msra.gmra.mxu0 %v3218_v20 }
0x16c0   :  { %v3308_v26 = vpop.f32.mrf.mxu0 }
0x16c1   :  { %v3309_v27 = vadd.f32 %v3494_v24, %v3308_v26 }
0x16c2   :  { %v4082_v28 = vpop.f32.mrf.mxu0 }
0x16c3   :  { %v3312_v30 = vmax.f32 %v3309_v27, 0.0 }
0x16c5   :  { %4116 = vmatmul.mubr.f32.vlgmr.msra.gmra.mxu1 %v3312_v30 }
0x1785   :  { %v3402_v10 = vpop.f32.mrf.mxu1 }
0x1786   :  { %v3403_v33 = vadd.f32 %v3495_v31, %v3402_v10 }
0x1787   :  { %v4117_v25 = vpop.f32.mrf.mxu1 }
0x1788   :  { %3407 = vst.msk [vmem:[#allocation26] sm:$0x3] %vm3406_vm11, %v3403_v33 }
0x1789   :  { %4524 = shalt.err (!%p4521_p9)
}
0x178a   :  { %3417 = dma.vmem_to_hbm [thread:$0]  %s3415_s1, 32, %s5442_s27, [#allocation4]  }
0x178b   :  { %4549 = dma.done.wait [#allocation4], 32  }
0x178c   :  { %4550 = vsyncadd [#allocation4], 4294967264 }
0x178d   :  { %3421 = vsyncpa [#allocation3], 1 }
0x178e   :  { %3422 = vsyncpa [#allocation6], 1 }
0x178f   :  { %3423 = vsyncpa [#allocation9], 1 }
0x1790   :  { %3424 = vsyncpa [#allocation12], 1 }
0x1791   :  { %3425 = vsyncpa [#allocation15], 1 }
0x1792   :  { %3426 = vsyncpa [#allocation18], 1 }
0x1793   :  { %3427 = vsyncpa [#allocation21], 1 }
0x1794   :  { %3428 = vsyncpa [#allocation24], 1 }
0x1795   :  { %3429 = vsyncpa [#allocation4], 1 }

</bundles_post_ra>
